<compile_context>
chip_gen: v7x
topology: tpu7x:2x2x1
jax: 0.10.0
libtpu: 0.0.40
codegen_flags: <defaults>
</compile_context>

<pallas_src>
import functools

import numpy as np

import jax
import jax.numpy as jnp
from jax.experimental import pallas as pl
from jax.experimental.pallas import tpu as pltpu


# ------------------------------- kernel ------------------------------------ #

def _fused_bottleneck_kernel(x_ref, s1_ref, b1_ref, w1t_ref, b2_ref, w2p_ref,
                             mask_ref, o_ref, *, W):
    """One image per grid step, channels-first (C, H*W) layout.

    x_ref   : (1, Cin,  HW)        input image
    s1_ref  : (Cin, 1)             bn1 scale (eval-mode folded)
    b1_ref  : (Cin, 1)             bn1 shift
    w1t_ref : (planes, Cin)        conv1 weight (bn2 scale folded in), transposed
    b2_ref  : (planes, 1)          bn2 shift
    w2p_ref : (9, Cout, planes)    conv2 taps, rows [0, Cin) zero-padded
    mask_ref: (9, 1, HW)           border-validity masks for the 9 taps (0/1 f32)
    o_ref   : (1, Cout, HW)        output: concat(x, conv2(...)) over channels
    """
    x = x_ref[0]                                    # (Cin, HW)
    cin = x.shape[0]
    HW = x.shape[1]
    cout = w2p_ref.shape[1]

    # bn1 (eval-mode, folded) + relu
    h1 = jnp.maximum(x * s1_ref[...] + b1_ref[...], 0.0)          # (Cin, HW)

    # 1x1 conv (bn2 scale folded into weight) + bn2 shift + relu
    y1 = jnp.dot(w1t_ref[...], h1, preferred_element_type=jnp.float32)  # (planes, HW)
    h2 = jnp.maximum(y1 + b2_ref[...], 0.0)                        # (planes, HW)

    # 3x3 conv, padding=1: 9 lane-rolled + masked matmuls accumulated.
    # w2p rows [0, Cin) are zero, so the conv result lands in rows [Cin, Cout).
    acc = jnp.zeros((cout, HW), jnp.float32)
    for kh in range(3):
        for kw in range(3):
            k = 3 * kh + kw
            d = (kh - 1) * W + (kw - 1)             # flat source offset of this tap
            if d == 0:
                tap = h2
            else:
                tap = pltpu.roll(h2, (-d) % HW, axis=1)            # tap[i] = h2[i + d]
                tap = tap * mask_ref[k]                            # zero out-of-image taps
            acc = acc + jnp.dot(w2p_ref[k], tap,
                                preferred_element_type=jnp.float32)

    # concat((x, conv_out), channel dim): dense full store of the conv accumulator,
    # then overwrite rows [0, Cin) with the exact input copy (aligned partial store).
    o_ref[0] = acc.astype(o_ref.dtype)
    o_ref[0, :cin, :] = x.astype(o_ref.dtype)


# ------------------------------- wrapper ------------------------------------ #

def _tap_masks(H, W):
    """(9, 1, H*W) f32 masks: 1 where the 3x3 tap source pixel lies inside the image."""
    hh = np.arange(H)[:, None]
    ww = np.arange(W)[None, :]
    m = np.zeros((9, 1, H * W), np.float32)
    for kh in range(3):
        for kw in range(3):
            valid = ((hh + kh - 1 >= 0) & (hh + kh - 1 < H)
                     & (ww + kw - 1 >= 0) & (ww + kw - 1 < W))
            m[3 * kh + kw, 0, :] = valid.astype(np.float32).reshape(-1)
    return jnp.asarray(m)


@jax.jit
def bottleneckden_forward(x_nchw, params):
    """x_nchw: (N, Cin, H, W) float32.  Returns (N, Cin + growth, H, W)."""
    scale1, shift1, w1 = params["scale1"], params["shift1"], params["w1"]
    scale2, shift2, w2 = params["scale2"], params["shift2"], params["w2"]

    N, Cin, H, W = x_nchw.shape
    planes = w1.shape[1]          # w1: (Cin, planes)
    growth = w2.shape[0]          # w2: (growth, planes, 3, 3)  (torch OIHW)
    HW = H * W
    Cout = Cin + growth

    # NCHW -> (N, Cin, H*W): free reshape, no transpose.
    x_rows = x_nchw.reshape(N, Cin, HW)

    # Fold bn2's scale into the 1x1 conv weight; transpose for (planes, Cin) @ (Cin, HW).
    w1t_eff = (w1 * scale2[None, :]).T                             # (planes, Cin)

    # conv2 weight: OIHW -> (kh*3+kw, growth, planes), zero-padded to Cout rows so the
    # in-kernel accumulator directly produces the concatenated channel layout.
    w2t = jnp.transpose(w2, (2, 3, 0, 1)).reshape(9, growth, planes)
    w2p = jnp.pad(w2t, ((0, 0), (Cin, 0), (0, 0)))                 # (9, Cout, planes)

    s1 = scale1.reshape(Cin, 1)
    b1 = shift1.reshape(Cin, 1)
    b2 = shift2.reshape(planes, 1)
    masks = _tap_masks(H, W)                                       # (9, 1, HW)

    out_rows = pl.pallas_call(
        functools.partial(_fused_bottleneck_kernel, W=W),
        out_shape=jax.ShapeDtypeStruct((N, Cout, HW), x_nchw.dtype),
        grid=(N,),
        in_specs=[
            pl.BlockSpec((1, Cin, HW), lambda n: (n, 0, 0)),       # x (per image)
            pl.BlockSpec((Cin, 1), lambda n: (0, 0)),              # bn1 scale
            pl.BlockSpec((Cin, 1), lambda n: (0, 0)),              # bn1 shift
            pl.BlockSpec((planes, Cin), lambda n: (0, 0)),         # conv1 weight (folded)
            pl.BlockSpec((planes, 1), lambda n: (0, 0)),           # bn2 shift
            pl.BlockSpec((9, Cout, planes), lambda n: (0, 0, 0)),  # conv2 taps (padded)
            pl.BlockSpec((9, 1, HW), lambda n: (0, 0, 0)),         # tap masks
        ],
        out_specs=pl.BlockSpec((1, Cout, HW), lambda n: (n, 0, 0)),
        compiler_params=pltpu.CompilerParams(
            dimension_semantics=("parallel",)),
    )(x_rows, s1, b1, w1t_eff, b2, w2p, masks)

    # (N, Cout, H*W) -> NCHW: free reshape, no transpose.
    return out_rows.reshape(N, Cout, H, W)


# ------------------------------- params ------------------------------------- #

def init_params(key, inplanes, expansion=4, growth_rate=12, eps=1e-5):
    planes = expansion * growth_rate
    ks = jax.random.split(key, 10)

    # BatchNorm parameters (eval mode: fold running stats into scale/shift).
    g1 = jax.random.uniform(ks[0], (inplanes,), jnp.float32, 0.5, 1.5)
    b1 = 0.1 * jax.random.normal(ks[1], (inplanes,), jnp.float32)
    m1 = 0.1 * jax.random.normal(ks[2], (inplanes,), jnp.float32)
    v1 = jax.random.uniform(ks[3], (inplanes,), jnp.float32, 0.5, 1.5)
    g2 = jax.random.uniform(ks[4], (planes,), jnp.float32, 0.5, 1.5)
    b2 = 0.1 * jax.random.normal(ks[5], (planes,), jnp.float32)
    m2 = 0.1 * jax.random.normal(ks[6], (planes,), jnp.float32)
    v2 = jax.random.uniform(ks[7], (planes,), jnp.float32, 0.5, 1.5)

    scale1 = g1 / jnp.sqrt(v1 + eps)
    shift1 = b1 - m1 * scale1
    scale2 = g2 / jnp.sqrt(v2 + eps)
    shift2 = b2 - m2 * scale2

    # conv1: 1x1, no bias -> stored as (Cin, planes) matmul weight.
    w1 = 0.1 * jax.random.normal(ks[8], (inplanes, planes), jnp.float32)
    # conv2: 3x3, pad=1, no bias, torch OIHW layout (growth, planes, 3, 3).
    w2 = 0.1 * jax.random.normal(ks[9], (growth_rate, planes, 3, 3), jnp.float32)

    return dict(scale1=scale1, shift1=shift1, w1=w1,
                scale2=scale2, shift2=shift2, w2=w2)


def reference_forward(x, p):
    """Pure-JAX reference (eval-mode BN), NCHW."""
    s1 = p["scale1"][None, :, None, None]; b1 = p["shift1"][None, :, None, None]
    s2 = p["scale2"][None, :, None, None]; b2 = p["shift2"][None, :, None, None]
    h1 = jnp.maximum(x * s1 + b1, 0.0)
    y1 = jnp.einsum("nchw,co->nohw", h1, p["w1"])
    h2 = jnp.maximum(y1 * s2 + b2, 0.0)
    y2 = jax.lax.conv_general_dilated(
        h2, p["w2"], window_strides=(1, 1), padding="SAME",
        dimension_numbers=("NCHW", "OIHW", "NCHW"))
    return jnp.concatenate([x, y2], axis=1)


# --------------------------------- main -------------------------------------- #

if __name__ == "__main__":
    key = jax.random.PRNGKey(0)
    kx, kp = jax.random.split(key)

    N, Cin, H, W = 2, 4, 16, 16           # inplanes = 4
    growth_rate, expansion = 12, 4        # planes = 48

    x = jax.random.normal(kx, (N, Cin, H, W), jnp.float32)
    params = init_params(kp, Cin, expansion=expansion, growth_rate=growth_rate)

    out = bottleneckden_forward(x, params)
    out = jax.block_until_ready(out)

    assert out.shape == (N, Cin + growth_rate, H, W), out.shape

    ref = reference_forward(x, params)
    err = float(jnp.max(jnp.abs(out - ref)))
    assert err < 5e-4, f"max abs error {err}"

    print("KERNEL_OK")
</pallas_src>

<mosaic_0001>
module attributes {stable_mosaic.version = 11 : i64} {
  func.func @_fused_bottleneck_kernel(%arg0: i32, %arg1: memref<1x4x256xf32, #tpu.memory_space<vmem>>, %arg2: memref<4x1xf32, #tpu.memory_space<vmem>>, %arg3: memref<4x1xf32, #tpu.memory_space<vmem>>, %arg4: memref<48x4xf32, #tpu.memory_space<vmem>>, %arg5: memref<48x1xf32, #tpu.memory_space<vmem>>, %arg6: memref<9x16x48xf32, #tpu.memory_space<vmem>>, %arg7: memref<9x1x256xf32, #tpu.memory_space<vmem>>, %arg8: memref<1x16x256xf32, #tpu.memory_space<vmem>>) attributes {dimension_semantics = [#tpu.dimension_semantics<parallel>], iteration_bounds = array<i64: 2>, scalar_prefetch = 0 : i64, scratch_operands = 0 : i64, tpu.core_type = #tpu.core_type<tc>, window_params = [{transform_indices = @transform_0, window_bounds = array<i64: 1, 4, 256>}, {pipeline_mode = #tpu.pipeline_mode<synchronous>, transform_indices = @transform_1, window_bounds = array<i64: 4, 1>}, {pipeline_mode = #tpu.pipeline_mode<synchronous>, transform_indices = @transform_2, window_bounds = array<i64: 4, 1>}, {pipeline_mode = #tpu.pipeline_mode<synchronous>, transform_indices = @transform_3, window_bounds = array<i64: 48, 4>}, {pipeline_mode = #tpu.pipeline_mode<synchronous>, transform_indices = @transform_4, window_bounds = array<i64: 48, 1>}, {pipeline_mode = #tpu.pipeline_mode<synchronous>, transform_indices = @transform_5, window_bounds = array<i64: 9, 16, 48>}, {pipeline_mode = #tpu.pipeline_mode<synchronous>, transform_indices = @transform_6, window_bounds = array<i64: 9, 1, 256>}, {transform_indices = @transform_7, window_bounds = array<i64: 1, 16, 256>}]} {
    %c0 = arith.constant 0 : index
    %c0_0 = arith.constant 0 : index
    %c0_1 = arith.constant 0 : index
    %0 = vector.load %arg1[%c0, %c0_0, %c0_1] : memref<1x4x256xf32, #tpu.memory_space<vmem>>, vector<1x4x256xf32>
    %1 = vector.shape_cast %0 : vector<1x4x256xf32> to vector<4x256xf32>
    %c0_2 = arith.constant 0 : index
    %c0_3 = arith.constant 0 : index
    %2 = vector.load %arg2[%c0_2, %c0_3] : memref<4x1xf32, #tpu.memory_space<vmem>>, vector<4x1xf32>
    %3 = vector.broadcast %2 : vector<4x1xf32> to vector<4x256xf32>
    %4 = arith.mulf %1, %3 : vector<4x256xf32>
    %c0_4 = arith.constant 0 : index
    %c0_5 = arith.constant 0 : index
    %5 = vector.load %arg3[%c0_4, %c0_5] : memref<4x1xf32, #tpu.memory_space<vmem>>, vector<4x1xf32>
    %6 = vector.broadcast %5 : vector<4x1xf32> to vector<4x256xf32>
    %7 = arith.addf %4, %6 : vector<4x256xf32>
    %cst = arith.constant 0.000000e+00 : f32
    %8 = vector.broadcast %cst : f32 to vector<4x256xf32>
    %9 = arith.maximumf %7, %8 : vector<4x256xf32>
    %c0_6 = arith.constant 0 : index
    %c0_7 = arith.constant 0 : index
    %10 = vector.load %arg4[%c0_6, %c0_7] : memref<48x4xf32, #tpu.memory_space<vmem>>, vector<48x4xf32>
    %cst_8 = arith.constant dense<0.000000e+00> : vector<48x256xf32>
    %11 = tpu.matmul %10, %9, %cst_8 {dimension_numbers = #tpu.dot_dimension_numbers<[1], [0], [0], [1], [0, 0, 1, 1], [], []>} : vector<48x4xf32>, vector<4x256xf32>, vector<48x256xf32> -> vector<48x256xf32>
    %c0_9 = arith.constant 0 : index
    %c0_10 = arith.constant 0 : index
    %12 = vector.load %arg5[%c0_9, %c0_10] : memref<48x1xf32, #tpu.memory_space<vmem>>, vector<48x1xf32>
    %13 = vector.broadcast %12 : vector<48x1xf32> to vector<48x256xf32>
    %14 = arith.addf %11, %13 : vector<48x256xf32>
    %cst_11 = arith.constant 0.000000e+00 : f32
    %15 = vector.broadcast %cst_11 : f32 to vector<48x256xf32>
    %16 = arith.maximumf %14, %15 : vector<48x256xf32>
    %cst_12 = arith.constant 0.000000e+00 : f32
    %17 = vector.broadcast %cst_12 : f32 to vector<16x256xf32>
    %c17_i32 = arith.constant 17 : i32
    %18 = tpu.dynamic_rotate %16 by %c17_i32 dim 1 : vector<48x256xf32>, i32 -> vector<48x256xf32>
    %c0_13 = arith.constant 0 : index
    %c0_14 = arith.constant 0 : index
    %c0_15 = arith.constant 0 : index
    %19 = vector.load %arg7[%c0_13, %c0_14, %c0_15] : memref<9x1x256xf32, #tpu.memory_space<vmem>>, vector<1x1x256xf32>
    %20 = vector.shape_cast %19 : vector<1x1x256xf32> to vector<1x256xf32>
    %21 = vector.broadcast %20 : vector<1x256xf32> to vector<48x256xf32>
    %22 = arith.mulf %18, %21 : vector<48x256xf32>
    %c0_16 = arith.constant 0 : index
    %c0_17 = arith.constant 0 : index
    %c0_18 = arith.constant 0 : index
    %23 = vector.load %arg6[%c0_16, %c0_17, %c0_18] : memref<9x16x48xf32, #tpu.memory_space<vmem>>, vector<1x16x48xf32>
    %24 = vector.shape_cast %23 : vector<1x16x48xf32> to vector<16x48xf32>
    %cst_19 = arith.constant dense<0.000000e+00> : vector<16x256xf32>
    %25 = tpu.matmul %24, %22, %cst_19 {dimension_numbers = #tpu.dot_dimension_numbers<[1], [0], [0], [1], [0, 0, 1, 1], [], []>} : vector<16x48xf32>, vector<48x256xf32>, vector<16x256xf32> -> vector<16x256xf32>
    %26 = arith.addf %17, %25 : vector<16x256xf32>
    %c16_i32 = arith.constant 16 : i32
    %27 = tpu.dynamic_rotate %16 by %c16_i32 dim 1 : vector<48x256xf32>, i32 -> vector<48x256xf32>
    %c1 = arith.constant 1 : index
    %c0_20 = arith.constant 0 : index
    %c0_21 = arith.constant 0 : index
    %28 = vector.load %arg7[%c1, %c0_20, %c0_21] : memref<9x1x256xf32, #tpu.memory_space<vmem>>, vector<1x1x256xf32>
    %29 = vector.shape_cast %28 : vector<1x1x256xf32> to vector<1x256xf32>
    %30 = vector.broadcast %29 : vector<1x256xf32> to vector<48x256xf32>
    %31 = arith.mulf %27, %30 : vector<48x256xf32>
    %c1_22 = arith.constant 1 : index
    %c0_23 = arith.constant 0 : index
    %c0_24 = arith.constant 0 : index
    %32 = vector.load %arg6[%c1_22, %c0_23, %c0_24] : memref<9x16x48xf32, #tpu.memory_space<vmem>>, vector<1x16x48xf32>
    %33 = vector.shape_cast %32 : vector<1x16x48xf32> to vector<16x48xf32>
    %cst_25 = arith.constant dense<0.000000e+00> : vector<16x256xf32>
    %34 = tpu.matmul %33, %31, %cst_25 {dimension_numbers = #tpu.dot_dimension_numbers<[1], [0], [0], [1], [0, 0, 1, 1], [], []>} : vector<16x48xf32>, vector<48x256xf32>, vector<16x256xf32> -> vector<16x256xf32>
    %35 = arith.addf %26, %34 : vector<16x256xf32>
    %c15_i32 = arith.constant 15 : i32
    %36 = tpu.dynamic_rotate %16 by %c15_i32 dim 1 : vector<48x256xf32>, i32 -> vector<48x256xf32>
    %c2 = arith.constant 2 : index
    %c0_26 = arith.constant 0 : index
    %c0_27 = arith.constant 0 : index
    %37 = vector.load %arg7[%c2, %c0_26, %c0_27] : memref<9x1x256xf32, #tpu.memory_space<vmem>>, vector<1x1x256xf32>
    %38 = vector.shape_cast %37 : vector<1x1x256xf32> to vector<1x256xf32>
    %39 = vector.broadcast %38 : vector<1x256xf32> to vector<48x256xf32>
    %40 = arith.mulf %36, %39 : vector<48x256xf32>
    %c2_28 = arith.constant 2 : index
    %c0_29 = arith.constant 0 : index
    %c0_30 = arith.constant 0 : index
    %41 = vector.load %arg6[%c2_28, %c0_29, %c0_30] : memref<9x16x48xf32, #tpu.memory_space<vmem>>, vector<1x16x48xf32>
    %42 = vector.shape_cast %41 : vector<1x16x48xf32> to vector<16x48xf32>
    %cst_31 = arith.constant dense<0.000000e+00> : vector<16x256xf32>
    %43 = tpu.matmul %42, %40, %cst_31 {dimension_numbers = #tpu.dot_dimension_numbers<[1], [0], [0], [1], [0, 0, 1, 1], [], []>} : vector<16x48xf32>, vector<48x256xf32>, vector<16x256xf32> -> vector<16x256xf32>
    %44 = arith.addf %35, %43 : vector<16x256xf32>
    %c1_i32 = arith.constant 1 : i32
    %45 = tpu.dynamic_rotate %16 by %c1_i32 dim 1 : vector<48x256xf32>, i32 -> vector<48x256xf32>
    %c3 = arith.constant 3 : index
    %c0_32 = arith.constant 0 : index
    %c0_33 = arith.constant 0 : index
    %46 = vector.load %arg7[%c3, %c0_32, %c0_33] : memref<9x1x256xf32, #tpu.memory_space<vmem>>, vector<1x1x256xf32>
    %47 = vector.shape_cast %46 : vector<1x1x256xf32> to vector<1x256xf32>
    %48 = vector.broadcast %47 : vector<1x256xf32> to vector<48x256xf32>
    %49 = arith.mulf %45, %48 : vector<48x256xf32>
    %c3_34 = arith.constant 3 : index
    %c0_35 = arith.constant 0 : index
    %c0_36 = arith.constant 0 : index
    %50 = vector.load %arg6[%c3_34, %c0_35, %c0_36] : memref<9x16x48xf32, #tpu.memory_space<vmem>>, vector<1x16x48xf32>
    %51 = vector.shape_cast %50 : vector<1x16x48xf32> to vector<16x48xf32>
    %cst_37 = arith.constant dense<0.000000e+00> : vector<16x256xf32>
    %52 = tpu.matmul %51, %49, %cst_37 {dimension_numbers = #tpu.dot_dimension_numbers<[1], [0], [0], [1], [0, 0, 1, 1], [], []>} : vector<16x48xf32>, vector<48x256xf32>, vector<16x256xf32> -> vector<16x256xf32>
    %53 = arith.addf %44, %52 : vector<16x256xf32>
    %c4 = arith.constant 4 : index
    %c0_38 = arith.constant 0 : index
    %c0_39 = arith.constant 0 : index
    %54 = vector.load %arg6[%c4, %c0_38, %c0_39] : memref<9x16x48xf32, #tpu.memory_space<vmem>>, vector<1x16x48xf32>
    %55 = vector.shape_cast %54 : vector<1x16x48xf32> to vector<16x48xf32>
    %cst_40 = arith.constant dense<0.000000e+00> : vector<16x256xf32>
    %56 = tpu.matmul %55, %16, %cst_40 {dimension_numbers = #tpu.dot_dimension_numbers<[1], [0], [0], [1], [0, 0, 1, 1], [], []>} : vector<16x48xf32>, vector<48x256xf32>, vector<16x256xf32> -> vector<16x256xf32>
    %57 = arith.addf %53, %56 : vector<16x256xf32>
    %c255_i32 = arith.constant 255 : i32
    %58 = tpu.dynamic_rotate %16 by %c255_i32 dim 1 : vector<48x256xf32>, i32 -> vector<48x256xf32>
    %c5 = arith.constant 5 : index
    %c0_41 = arith.constant 0 : index
    %c0_42 = arith.constant 0 : index
    %59 = vector.load %arg7[%c5, %c0_41, %c0_42] : memref<9x1x256xf32, #tpu.memory_space<vmem>>, vector<1x1x256xf32>
    %60 = vector.shape_cast %59 : vector<1x1x256xf32> to vector<1x256xf32>
    %61 = vector.broadcast %60 : vector<1x256xf32> to vector<48x256xf32>
    %62 = arith.mulf %58, %61 : vector<48x256xf32>
    %c5_43 = arith.constant 5 : index
    %c0_44 = arith.constant 0 : index
    %c0_45 = arith.constant 0 : index
    %63 = vector.load %arg6[%c5_43, %c0_44, %c0_45] : memref<9x16x48xf32, #tpu.memory_space<vmem>>, vector<1x16x48xf32>
    %64 = vector.shape_cast %63 : vector<1x16x48xf32> to vector<16x48xf32>
    %cst_46 = arith.constant dense<0.000000e+00> : vector<16x256xf32>
    %65 = tpu.matmul %64, %62, %cst_46 {dimension_numbers = #tpu.dot_dimension_numbers<[1], [0], [0], [1], [0, 0, 1, 1], [], []>} : vector<16x48xf32>, vector<48x256xf32>, vector<16x256xf32> -> vector<16x256xf32>
    %66 = arith.addf %57, %65 : vector<16x256xf32>
    %c241_i32 = arith.constant 241 : i32
    %67 = tpu.dynamic_rotate %16 by %c241_i32 dim 1 : vector<48x256xf32>, i32 -> vector<48x256xf32>
    %c6 = arith.constant 6 : index
    %c0_47 = arith.constant 0 : index
    %c0_48 = arith.constant 0 : index
    %68 = vector.load %arg7[%c6, %c0_47, %c0_48] : memref<9x1x256xf32, #tpu.memory_space<vmem>>, vector<1x1x256xf32>
    %69 = vector.shape_cast %68 : vector<1x1x256xf32> to vector<1x256xf32>
    %70 = vector.broadcast %69 : vector<1x256xf32> to vector<48x256xf32>
    %71 = arith.mulf %67, %70 : vector<48x256xf32>
    %c6_49 = arith.constant 6 : index
    %c0_50 = arith.constant 0 : index
    %c0_51 = arith.constant 0 : index
    %72 = vector.load %arg6[%c6_49, %c0_50, %c0_51] : memref<9x16x48xf32, #tpu.memory_space<vmem>>, vector<1x16x48xf32>
    %73 = vector.shape_cast %72 : vector<1x16x48xf32> to vector<16x48xf32>
    %cst_52 = arith.constant dense<0.000000e+00> : vector<16x256xf32>
    %74 = tpu.matmul %73, %71, %cst_52 {dimension_numbers = #tpu.dot_dimension_numbers<[1], [0], [0], [1], [0, 0, 1, 1], [], []>} : vector<16x48xf32>, vector<48x256xf32>, vector<16x256xf32> -> vector<16x256xf32>
    %75 = arith.addf %66, %74 : vector<16x256xf32>
    %c240_i32 = arith.constant 240 : i32
    %76 = tpu.dynamic_rotate %16 by %c240_i32 dim 1 : vector<48x256xf32>, i32 -> vector<48x256xf32>
    %c7 = arith.constant 7 : index
    %c0_53 = arith.constant 0 : index
    %c0_54 = arith.constant 0 : index
    %77 = vector.load %arg7[%c7, %c0_53, %c0_54] : memref<9x1x256xf32, #tpu.memory_space<vmem>>, vector<1x1x256xf32>
    %78 = vector.shape_cast %77 : vector<1x1x256xf32> to vector<1x256xf32>
    %79 = vector.broadcast %78 : vector<1x256xf32> to vector<48x256xf32>
    %80 = arith.mulf %76, %79 : vector<48x256xf32>
    %c7_55 = arith.constant 7 : index
    %c0_56 = arith.constant 0 : index
    %c0_57 = arith.constant 0 : index
    %81 = vector.load %arg6[%c7_55, %c0_56, %c0_57] : memref<9x16x48xf32, #tpu.memory_space<vmem>>, vector<1x16x48xf32>
    %82 = vector.shape_cast %81 : vector<1x16x48xf32> to vector<16x48xf32>
    %cst_58 = arith.constant dense<0.000000e+00> : vector<16x256xf32>
    %83 = tpu.matmul %82, %80, %cst_58 {dimension_numbers = #tpu.dot_dimension_numbers<[1], [0], [0], [1], [0, 0, 1, 1], [], []>} : vector<16x48xf32>, vector<48x256xf32>, vector<16x256xf32> -> vector<16x256xf32>
    %84 = arith.addf %75, %83 : vector<16x256xf32>
    %c239_i32 = arith.constant 239 : i32
    %85 = tpu.dynamic_rotate %16 by %c239_i32 dim 1 : vector<48x256xf32>, i32 -> vector<48x256xf32>
    %c8 = arith.constant 8 : index
    %c0_59 = arith.constant 0 : index
    %c0_60 = arith.constant 0 : index
    %86 = vector.load %arg7[%c8, %c0_59, %c0_60] : memref<9x1x256xf32, #tpu.memory_space<vmem>>, vector<1x1x256xf32>
    %87 = vector.shape_cast %86 : vector<1x1x256xf32> to vector<1x256xf32>
    %88 = vector.broadcast %87 : vector<1x256xf32> to vector<48x256xf32>
    %89 = arith.mulf %85, %88 : vector<48x256xf32>
    %c8_61 = arith.constant 8 : index
    %c0_62 = arith.constant 0 : index
    %c0_63 = arith.constant 0 : index
    %90 = vector.load %arg6[%c8_61, %c0_62, %c0_63] : memref<9x16x48xf32, #tpu.memory_space<vmem>>, vector<1x16x48xf32>
    %91 = vector.shape_cast %90 : vector<1x16x48xf32> to vector<16x48xf32>
    %cst_64 = arith.constant dense<0.000000e+00> : vector<16x256xf32>
    %92 = tpu.matmul %91, %89, %cst_64 {dimension_numbers = #tpu.dot_dimension_numbers<[1], [0], [0], [1], [0, 0, 1, 1], [], []>} : vector<16x48xf32>, vector<48x256xf32>, vector<16x256xf32> -> vector<16x256xf32>
    %93 = arith.addf %84, %92 : vector<16x256xf32>
    %c0_65 = arith.constant 0 : index
    %c0_66 = arith.constant 0 : index
    %c0_67 = arith.constant 0 : index
    %94 = vector.load %arg8[%c0_65, %c0_66, %c0_67] : memref<1x16x256xf32, #tpu.memory_space<vmem>>, vector<1x16x256xf32>
    %95 = vector.shape_cast %94 : vector<1x16x256xf32> to vector<16x256xf32>
    %96 = vector.shape_cast %93 : vector<16x256xf32> to vector<1x16x256xf32>
    tpu.vector_store %arg8[%c0_65, %c0_66, %c0_67], %96 {strides = array<i32>} : memref<1x16x256xf32, #tpu.memory_space<vmem>>, vector<1x16x256xf32>,
    %c0_68 = arith.constant 0 : index
    %c0_69 = arith.constant 0 : index
    %c0_70 = arith.constant 0 : index
    %97 = vector.load %arg8[%c0_68, %c0_69, %c0_70] : memref<1x16x256xf32, #tpu.memory_space<vmem>>, vector<1x4x256xf32>
    %98 = vector.shape_cast %97 : vector<1x4x256xf32> to vector<4x256xf32>
    %99 = vector.shape_cast %1 : vector<4x256xf32> to vector<1x4x256xf32>
    tpu.vector_store %arg8[%c0_68, %c0_69, %c0_70], %99 {strides = array<i32>} : memref<1x16x256xf32, #tpu.memory_space<vmem>>, vector<1x4x256xf32>,
    return
  }
  func.func @transform_0(%arg0: i32) -> (i32, i32, i32) {
    %c0_i32 = arith.constant 0 : i32
    %c0_i32_0 = arith.constant 0 : i32
    %c0_i32_1 = arith.constant 0 : i32
    return %arg0, %c0_i32, %c0_i32_0 : i32, i32, i32
  }
  func.func @transform_1(%arg0: i32) -> (i32, i32) {
    %c0_i32 = arith.constant 0 : i32
    %c0_i32_0 = arith.constant 0 : i32
    %c0_i32_1 = arith.constant 0 : i32
    return %c0_i32, %c0_i32_0 : i32, i32
  }
  func.func @transform_2(%arg0: i32) -> (i32, i32) {
    %c0_i32 = arith.constant 0 : i32
    %c0_i32_0 = arith.constant 0 : i32
    %c0_i32_1 = arith.constant 0 : i32
    return %c0_i32, %c0_i32_0 : i32, i32
  }
  func.func @transform_3(%arg0: i32) -> (i32, i32) {
    %c0_i32 = arith.constant 0 : i32
    %c0_i32_0 = arith.constant 0 : i32
    %c0_i32_1 = arith.constant 0 : i32
    return %c0_i32, %c0_i32_0 : i32, i32
  }
  func.func @transform_4(%arg0: i32) -> (i32, i32) {
    %c0_i32 = arith.constant 0 : i32
    %c0_i32_0 = arith.constant 0 : i32
    %c0_i32_1 = arith.constant 0 : i32
    return %c0_i32, %c0_i32_0 : i32, i32
  }
  func.func @transform_5(%arg0: i32) -> (i32, i32, i32) {
    %c0_i32 = arith.constant 0 : i32
    %c0_i32_0 = arith.constant 0 : i32
    %c0_i32_1 = arith.constant 0 : i32
    %c0_i32_2 = arith.constant 0 : i32
    return %c0_i32, %c0_i32_0, %c0_i32_1 : i32, i32, i32
  }
  func.func @transform_6(%arg0: i32) -> (i32, i32, i32) {
    %c0_i32 = arith.constant 0 : i32
    %c0_i32_0 = arith.constant 0 : i32
    %c0_i32_1 = arith.constant 0 : i32
    %c0_i32_2 = arith.constant 0 : i32
    return %c0_i32, %c0_i32_0, %c0_i32_1 : i32, i32, i32
  }
  func.func @transform_7(%arg0: i32) -> (i32, i32, i32) {
    %c0_i32 = arith.constant 0 : i32
    %c0_i32_0 = arith.constant 0 : i32
    %c0_i32_1 = arith.constant 0 : i32
    return %arg0, %c0_i32, %c0_i32_0 : i32, i32, i32
  }
}

</mosaic_0001>

<bundles_post_ra>
// kernel: bottleneckden_forward.1
= control target key start
LH: loop header
LB: loop body
LE: loop exit
PB: predicated region body
PF: predicated region fallthrough
CT: control target
= control target key end

     0   :  { %s2137_s24 = smov 0   ;;  %s3243_s0 = inlined_call_operand.vmem [shape: f32[2,4,256], index: 0, kind: input, shape index: {}]   ;;  %s3244_s1 = inlined_call_operand.vmem [shape: f32[4,1], index: 1, kind: input, shape index: {}]   ;;  %s3245_s2 = inlined_call_operand.vmem [shape: f32[4,1], index: 2, kind: input, shape index: {}]   ;;  %s3246_s3 = inlined_call_operand.vmem [shape: f32[48,4], index: 3, kind: input, shape index: {}]   ;;  %s3247_s4 = inlined_call_operand.vmem [shape: f32[48,1], index: 4, kind: input, shape index: {}]   ;;  %s3248_s5 = inlined_call_operand.vmem [shape: f32[9,16,48], index: 5, kind: input, shape index: {}]   ;;  %s3249_s6 = inlined_call_operand.vmem [shape: f32[9,1,256], index: 6, kind: input, shape index: {}]   ;;  %s3250_s7 = inlined_call_operand.vmem [shape: f32[2,16,256], index: 7, kind: output, shape index: {}]  }
   0x1 LB: > { %s1853_s25 = sadd.s32 4294967295, %s2084_s24   ;;  %p1857_p0 = scmp.ge.s32.totalorder %s2084_s24, 1  ;;  %s2084_s24 = sphi %s2137_s24, %s17_s24  }
   0x2   : > { %p237_p1 = scmp.lt.s32.totalorder %s2084_s24, 3 }
   0x4   : > { %p238_p2 = pnand %p1857_p0, %p237_p1 }
   0x6   : > { %241 = sbr.rel (%p238_p2) target bundleno = 910 (0x38e), region = 48 }
   0xd   : > { %v280_v0 = vld [vmem:[%s3244_s1] sm:$0xf]  ;;  %v2086_v1 = vmov 0   ;;  %v317_v3 = vld [vmem:[%s3247_s4 + $0x10] sm:$0xff]  ;;  %v3251_v5 = vmov 0.0   ;;  %v316_v7 = vld [vmem:[%s3247_s4 + $0x8] sm:$0xff]  ;;  %v288_v12 = vlaneseq }
   0xe   : > { %2074 = vset.pattern.permute.xlu0 %v2086_v1  ;;  %2075 = vset.pattern.permute.xlu1 %v2086_v1  ;;  %v294_v2 = vld [vmem:[%s3245_s2] sm:$0xf]  ;;  %v318_v8 = vld [vmem:[%s3247_s4 + $0x18] sm:$0xff]  ;;  %v320_v9 = vld [vmem:[%s3247_s4 + $0x28] sm:$0xff]  ;;  %p269_p3 = scmp.lt.s32.totalorder %s1853_s25, 1  ;;  %vm372_vm0 = vcmask 1043456  }
   0xf   : > { %283 = vperm.xlu0 %2074, %v280_v0   ;;  %v319_v4 = vld [vmem:[%s3247_s4 + $0x20] sm:$0xff]  ;;  %441 = vmatprep.mubr.f32.mxu0 %v3251_v5  ;;  %v2088_v10 = vmov 839922192   ;;  %v2178_v14 = vshrl.u32 %v288_v12, 7  ;;  %vm353_vm1 = vcmask 31744   ;;  %v310_v26 = vld [vmem:[%s3246_s3 + $0x8] sm:$0xff] }
  0x10   : > { %1164 = vmatprep.mubr.f32.mxu1 %v3251_v5  ;;  %v315_v6 = vld [vmem:[%s3247_s4] sm:$0xff]  ;;  %v286_v11 = vunpack.c.l.s4 %v2088_v10  ;;  %s3354_s25 = smov (!%p269_p3, %s1853_s25), 1  ;;  %v311_v27 = vld [vmem:[%s3246_s3 + $0x10] sm:$0xff]  ;;  %v312_v28 = vld [vmem:[%s3246_s3 + $0x18] sm:$0xff]  ;;  %s2089_s14 = smov 16   ;;  %vm620_vm2 = vcmask 392192  }
  0x11   : > { %323 = vperm.xlu1 %2075, %v315_v6   ;;  %s1913_s19 = sshll.u32 %s3354_s25, 3  ;;  %v309_v25 = vld [vmem:[%s3246_s3] sm:$0xff]  ;;  %v314_v30 = vld [vmem:[%s3246_s3 + $0x28] sm:$0xff]  ;;  %s2090_s15 = smov 127  }
  0x12   : > { %v287_v13 = vunpack.c.0.s8 %v286_v11  ;;  %s2185_s22 = scalar_lea.vmem %s3243_s0, %s1913_s19  ;;  %v313_v29 = vld [vmem:[%s3246_s3 + $0x20] sm:$0xff]  ;;  %s2091_s16 = smov 17  }
  0x13   : > { %297 = vperm.xlu0 %2074, %v294_v2   ;;  %v279_v18 = vld [vmem:[%s2185_s22] sm:$0xff]  ;;  %s2092_s17 = smov 113   ;;  %s2093_s18 = smov 15  }
  0x14   : > { %v290_v15 = vsub.s32 %v287_v13, %v2178_v14  ;;  %s2094_s19 = smov 112   ;;  %s2095_s20 = smov 1  }
  0x15   : > { %328 = vperm.xlu1 %2075, %v316_v7   ;;  %s2096_s21 = smov 111  }
  0x17   : > { %333 = vperm.xlu0 %2074, %v317_v3  }
  0x19   : > { %338 = vperm.xlu1 %2075, %v318_v8  }
  0x1b   : > { %343 = vperm.xlu0 %2074, %v319_v4  }
  0x1d   : > { %348 = vperm.xlu1 %2075, %v320_v9  }
  0x8e   : > { %v284_v16 = vpop.permute.xlu0 %283 }
  0x8f   : > { %v291_v17 = vrot.slane %v284_v16, %v290_v15 }
  0x90   : > { %v324_v31 = vpop.permute.xlu1 %323 }
  0x91   : > { %v293_v20 = vmul.f32 %v291_v17, %v279_v18  ;;  %v1887_v18 = vld [vmem:[%s3248_s5 + $0x40] sm:$0xff] }
  0x92   : > { %v298_v19 = vpop.permute.xlu0 %297 }
  0x93   : > { %v305_v21 = vrot.slane %v298_v19, %v290_v15 }
  0x94   : > { %v329_v36 = vpop.permute.xlu1 %328 }
  0x95   : > { %v307_v22 = vadd.f32 %v305_v21, %v293_v20 }
  0x96   : > { %v334_v49 = vpop.permute.xlu0 %333 }
  0x97   : > { %v308_v23 = vmax.f32 %v307_v22, 0.0 }
  0x98   : > { %v339_v50 = vpop.permute.xlu1 %338 }
  0x99   : > { %v352_v24 = vcombine.high %v308_v23, %v308_v23 }
  0x9a   : > { %v344_v0 = vpop.permute.xlu0 %343 }
  0x9b   : > { %1862 = vmatprep.subr.msk.mxu0 %vm372_vm0, %v352_v24 }
  0x9c   : > { %1863 = vmatpush1.msk.msra.mxu0 %vm372_vm0, %v308_v23  ;;  %v349_v1 = vpop.permute.xlu1 %348 }
  0x9d   : > { %1864 = vmatmul.mubr.msk.f32.vlgmr.msra.gmra.mrb[0].mxu0 %vm353_vm1, %v309_v25 }
  0x9e   : > { %447 = vmatprep.mubr.f32.mxu0 %v3251_v5 }
  0xa1   : > { %1865 = vmatmul.mubr.msk.f32.gmra.mrb[2].mxu0 %vm353_vm1, %v310_v26 }
  0xa2   : > { %453 = vmatprep.mubr.f32.mxu0 %v3251_v5 }
  0xa5   : > { %1866 = vmatmul.mubr.msk.f32.gmra.mrb[4].mxu0 %vm353_vm1, %v311_v27 }
  0xa6   : > { %459 = vmatprep.mubr.f32.mxu0 %v3251_v5 }
  0xa9   : > { %1867 = vmatmul.mubr.msk.f32.gmra.mrb[6].mxu0 %vm353_vm1, %v312_v28 }
  0xaa   : > { %465 = vmatprep.mubr.f32.mxu0 %v3251_v5 }
  0xad   : > { %1868 = vmatmul.mubr.msk.f32.gmra.mrb[8].mxu0 %vm353_vm1, %v313_v29 }
  0xae   : > { %471 = vmatprep.mubr.f32.mxu0 %v3251_v5 }
  0xb1   : > { %1869 = vmatmul.mubr.msk.f32.gmra.mrb[10].mxu0 %vm353_vm1, %v314_v30 }
  0xb2   : > { %691 = vmatprep.mubr.f32.mxu0 %v3251_v5 }
 0x170   : > { %v443_v32 = vpop.f32.mrb[0].mxu0 }
 0x171   : > { %v444_v33 = vadd.f32 %v443_v32, %v324_v31  ;;  %v445_v34 = vpop.f32.mrb[1].mxu0  ;;  %v2422_v32 = vand.u32 127, %v288_v12  ;;  %v1870_v12 = vld [vmem:[%s3249_s6 + $0x2] sm:$0x3] }
 0x172   : > { %v446_v37 = vadd.f32 %v445_v34, %v324_v31 }
 0x173   : > { %v2218_v35 = vmax.f32 %v444_v33, 0.0  ;;  %vm579_vm3 = vcmp.lt.s32.totalorder %v2422_v32, 16  ;;  %vm1205_vm4 = vcmp.lt.s32.totalorder %v2422_v32, 127  ;;  %vm516_vm5 = vcmp.lt.s32.totalorder %v2422_v32, 17 }
 0x174   : > { %v449_v38 = vpop.f32.mrb[2].mxu0  ;;  %v2224_v43 = vmax.f32 %v446_v37, 0.0  ;;  %vm1357_vm6 = vcmp.lt.s32.totalorder %v2422_v32, 113  ;;  %vm811_vm7 = vcmp.lt.s32.totalorder %v2422_v32, 15  ;;  %vm1509_vm8 = vcmp.lt.s32.totalorder %v2422_v32, 112 }
 0x175   : > { %v450_v39 = vadd.f32 %v449_v38, %v329_v36  ;;  %v451_v40 = vpop.f32.mrb[3].mxu0  ;;  %555 = vrot.lane.b32.xlu0 %v2218_v35, %s2089_s14  ;;  %vm963_vm9 = vcmp.lt.s32.totalorder %v2422_v32, 1  ;;  %vm1661_vm10 = vcmp.lt.s32.totalorder %v2422_v32, 111 }
 0x176   : > { %v452_v41 = vadd.f32 %v451_v40, %v329_v36  ;;  %v2432_v36 = vsub.s32 1, %v2178_v14 }
 0x177   : > { %v2222_v42 = vmax.f32 %v450_v39, 0.0  ;;  %v529_v39 = vld [vmem:[%s3249_s6] sm:$0x3] }
 0x178   : > { %v2226_v44 = vmax.f32 %v452_v41, 0.0  ;;  %v455_v45 = vpop.f32.mrb[4].mxu0  ;;  %v2454_v41 = vrot.slane %v1870_v12, %v2432_v36 }
 0x179   : > { %v457_v46 = vpop.f32.mrb[5].mxu0  ;;  %557 = vrot.lane.b32.xlu1 %v2222_v42, %s2089_s14  ;;  %1181 = vrot.lane.b32.xlu0 %v2218_v35, %s2090_s15  ;;  %v1965_v47 = vpack.c.bf16 %v2222_v42, %v2218_v35  ;;  %v456_v55 = vadd.f32 %v455_v45, %v334_v49  ;;  %v1888_v45 = vld [vmem:[%s3248_s5 + $0x48] sm:$0xff] }
 0x17a   : > { %v1963_v48 = vpack.c.bf16 %v2226_v44, %v2224_v43  ;;  %v458_v51 = vadd.f32 %v457_v46, %v334_v49 }
 0x17b   : > { %v2250_v62 = vmax.f32 %v456_v55, 0.0 }
 0x17c   : > { %v461_v52 = vpop.f32.mrb[6].mxu0  ;;  %1964 = vmatprep.subr.bf16.mxu1 %v1963_v48  ;;  %v2240_v57 = vmax.f32 %v458_v51, 0.0  ;;  %v1896_v51 = vld [vmem:[%s3249_s6 + $0xc] sm:$0x3] }
 0x17d   : > { %v462_v53 = vadd.f32 %v461_v52, %v339_v50  ;;  %v463_v54 = vpop.f32.mrb[7].mxu0  ;;  %1183 = vrot.lane.b32.xlu1 %v2222_v42, %s2090_s15  ;;  %490 = vrot.lane.b32.xlu0 %v2218_v35, %s2091_s16 }
 0x17e   : > { %v464_v56 = vadd.f32 %v463_v54, %v339_v50  ;;  %1966 = vmatpush1.bf16.msra.mxu1 %v1965_v47  ;;  %v2479_v50 = vrot.slane %v529_v39, %v2432_v36 }
 0x17f   : > { %v2242_v58 = vmax.f32 %v462_v53, 0.0 }
 0x180   : > { %v2244_v59 = vmax.f32 %v464_v56, 0.0  ;;  %v467_v60 = vpop.f32.mrb[8].mxu0 }
 0x181   : > { %v469_v61 = vpop.f32.mrb[9].mxu0  ;;  %492 = vrot.lane.b32.xlu1 %v2222_v42, %s2091_s16  ;;  %1333 = vrot.lane.b32.xlu0 %v2218_v35, %s2092_s17  ;;  %v1969_v4 = vpack.c.bf16 %v2242_v58, %v2250_v62  ;;  %v468_v8 = vadd.f32 %v467_v60, %v344_v0 }
 0x182   : > { %v1967_v63 = vpack.c.bf16 %v2244_v59, %v2240_v57  ;;  %v470_v2 = vadd.f32 %v469_v61, %v344_v0 }
 0x183   : > { %v2270_v15 = vmax.f32 %v468_v8, 0.0 }
 0x184   : > { %v473_v3 = vpop.f32.mrb[10].mxu0  ;;  %1968 = vmatprep.subr.bf16.mxu1 %v1967_v63  ;;  %v2260_v10 = vmax.f32 %v470_v2, 0.0  ;;  %v2507_v63 = vrot.slane %v1896_v51, %v2432_v36 }
 0x185   : > { %v474_v6 = vadd.f32 %v473_v3, %v349_v1  ;;  %v475_v7 = vpop.f32.mrb[11].mxu0  ;;  %1335 = vrot.lane.b32.xlu1 %v2222_v42, %s2092_s17  ;;  %787 = vrot.lane.b32.xlu0 %v2218_v35, %s2093_s18 }
 0x186   : > { %v476_v9 = vadd.f32 %v475_v7, %v349_v1  ;;  %1970 = vmatpush1.bf16.msra.mxu1 %v1969_v4 }
 0x187   : > { %v2262_v11 = vmax.f32 %v474_v6, 0.0 }
 0x188   : > { %v2264_v13 = vmax.f32 %v476_v9, 0.0 }
 0x189   : > { %789 = vrot.lane.b32.xlu1 %v2222_v42, %s2093_s18  ;;  %1485 = vrot.lane.b32.xlu0 %v2218_v35, %s2094_s19  ;;  %v1973_v17 = vpack.c.bf16 %v2262_v11, %v2270_v15 }
 0x18a   : > { %v1971_v16 = vpack.c.bf16 %v2264_v13, %v2260_v10 }
 0x18c   : > { %1972 = vmatprep.subr.bf16.mxu1 %v1971_v16 }
 0x18d   : > { %1487 = vrot.lane.b32.xlu1 %v2222_v42, %s2094_s19  ;;  %939 = vrot.lane.b32.xlu0 %v2218_v35, %s2095_s20 }
 0x18e   : > { %1974 = vmatpush1.bf16.msra.mxu1 %v1973_v17  ;;  %v1877_v17 = vld [vmem:[%s3249_s6 + $0x4] sm:$0x3] }
 0x191   : > { %941 = vrot.lane.b32.xlu1 %v2222_v42, %s2095_s20  ;;  %1637 = vrot.lane.b32.xlu0 %v2218_v35, %s2096_s21  ;;  %v2429_v35 = vsub.s32 0, %v2178_v14  ;;  %v1891_v14 = vld [vmem:[%s3249_s6 + $0xa] sm:$0x3] }
 0x192   : > { %1889 = vmatmul.mubr.msk.f32.vlgmr.msra.gmra.mrb[0].mxu1 %vm620_vm2, %v1887_v18  ;;  %v2472_v47 = vrot.slane %v1891_v14, %v2432_v36 }
 0x193   : > { %1170 = vmatprep.mubr.f32.mxu1 %v3251_v5  ;;  %v2451_v40 = vrot.slane %v1870_v12, %v2429_v35  ;;  %v2476_v49 = vrot.slane %v529_v39, %v2429_v35  ;;  %v2543_v39 = vrot.slane %v1877_v17, %v2432_v36 }
 0x195   : > { %1639 = vrot.lane.b32.xlu1 %v2222_v42, %s2096_s21  ;;  %567 = vrot.lane.b32.xlu0 %v2224_v43, %s2089_s14 }
 0x196   : > { %1890 = vmatmul.mubr.msk.f32.gmra.mrb[2].mxu1 %vm620_vm2, %v1888_v45 }
 0x197   : > { %1316 = vmatprep.mubr.f32.mxu1 %v3251_v5 }
 0x199   : > { %569 = vrot.lane.b32.xlu1 %v2226_v44, %s2089_s14  ;;  %1193 = vrot.lane.b32.xlu0 %v2224_v43, %s2090_s15 }
 0x19d   : > { %1195 = vrot.lane.b32.xlu1 %v2226_v44, %s2090_s15  ;;  %502 = vrot.lane.b32.xlu0 %v2224_v43, %s2091_s16 }
 0x1a1   : > { %504 = vrot.lane.b32.xlu1 %v2226_v44, %s2091_s16  ;;  %1345 = vrot.lane.b32.xlu0 %v2224_v43, %s2092_s17 }
 0x1a5   : > { %1347 = vrot.lane.b32.xlu1 %v2226_v44, %s2092_s17  ;;  %799 = vrot.lane.b32.xlu0 %v2224_v43, %s2093_s18 }
 0x1a9   : > { %801 = vrot.lane.b32.xlu1 %v2226_v44, %s2093_s18  ;;  %1497 = vrot.lane.b32.xlu0 %v2224_v43, %s2094_s19 }
 0x1ad   : > { %1499 = vrot.lane.b32.xlu1 %v2226_v44, %s2094_s19  ;;  %951 = vrot.lane.b32.xlu0 %v2224_v43, %s2095_s20 }
 0x1b1   : > { %953 = vrot.lane.b32.xlu1 %v2226_v44, %s2095_s20  ;;  %1649 = vrot.lane.b32.xlu0 %v2224_v43, %s2096_s21 }
 0x1b5   : > { %1651 = vrot.lane.b32.xlu1 %v2226_v44, %s2096_s21  ;;  %559 = vrot.lane.b32.xlu0 %v2250_v62, %s2089_s14  ;;  %v2466_v44 = vrot.slane %v1891_v14, %v2429_v35  ;;  %v2540_v14 = vrot.slane %v1877_v17, %v2429_v35 }
 0x1b9   : > { %561 = vrot.lane.b32.xlu1 %v2242_v58, %s2089_s14  ;;  %1185 = vrot.lane.b32.xlu0 %v2250_v62, %s2090_s15 }
 0x1bd   : > { %1187 = vrot.lane.b32.xlu1 %v2242_v58, %s2090_s15  ;;  %494 = vrot.lane.b32.xlu0 %v2250_v62, %s2091_s16 }
 0x1c1   : > { %496 = vrot.lane.b32.xlu1 %v2242_v58, %s2091_s16  ;;  %1337 = vrot.lane.b32.xlu0 %v2250_v62, %s2092_s17 }
 0x1c5   : > { %1339 = vrot.lane.b32.xlu1 %v2242_v58, %s2092_s17  ;;  %791 = vrot.lane.b32.xlu0 %v2250_v62, %s2093_s18 }
 0x1c9   : > { %793 = vrot.lane.b32.xlu1 %v2242_v58, %s2093_s18  ;;  %1489 = vrot.lane.b32.xlu0 %v2250_v62, %s2094_s19 }
 0x1cd   : > { %1491 = vrot.lane.b32.xlu1 %v2242_v58, %s2094_s19  ;;  %943 = vrot.lane.b32.xlu0 %v2250_v62, %s2095_s20 }
 0x1d1   : > { %945 = vrot.lane.b32.xlu1 %v2242_v58, %s2095_s20  ;;  %1641 = vrot.lane.b32.xlu0 %v2250_v62, %s2096_s21  ;;  %v2504_v62 = vrot.slane %v1896_v51, %v2429_v35 }
 0x1d5   : > { %1643 = vrot.lane.b32.xlu1 %v2242_v58, %s2096_s21  ;;  %571 = vrot.lane.b32.xlu0 %v2240_v57, %s2089_s14 }
 0x1d9   : > { %573 = vrot.lane.b32.xlu1 %v2244_v59, %s2089_s14  ;;  %1197 = vrot.lane.b32.xlu0 %v2240_v57, %s2090_s15 }
 0x1dd   : > { %1199 = vrot.lane.b32.xlu1 %v2244_v59, %s2090_s15  ;;  %506 = vrot.lane.b32.xlu0 %v2240_v57, %s2091_s16 }
 0x1e1   : > { %508 = vrot.lane.b32.xlu1 %v2244_v59, %s2091_s16  ;;  %1349 = vrot.lane.b32.xlu0 %v2240_v57, %s2092_s17 }
 0x1e5   : > { %1351 = vrot.lane.b32.xlu1 %v2244_v59, %s2092_s17  ;;  %803 = vrot.lane.b32.xlu0 %v2240_v57, %s2093_s18 }
 0x1e7   : > { %v556_v19 = vpop.permute.xlu0 %555 }
 0x1e9   : > { %805 = vrot.lane.b32.xlu1 %v2244_v59, %s2093_s18  ;;  %1501 = vrot.lane.b32.xlu0 %v2240_v57, %s2094_s19 }
 0x1eb   : > { %v558_v20 = vpop.permute.xlu1 %557  ;;  %v1182_v21 = vpop.permute.xlu0 %1181 }
 0x1ed   : > { %1503 = vrot.lane.b32.xlu1 %v2244_v59, %s2094_s19  ;;  %955 = vrot.lane.b32.xlu0 %v2240_v57, %s2095_s20 }
 0x1ef   : > { %v2381_v22 = vpop.permute.xlu1 %1183  ;;  %v2383_v23 = vpop.permute.xlu0 %490 }
 0x1f1   : > { %957 = vrot.lane.b32.xlu1 %v2244_v59, %s2095_s20  ;;  %563 = vrot.lane.b32.xlu0 %v2270_v15, %s2089_s14 }
 0x1f3   : > { %v2389_v24 = vpop.permute.xlu1 %492  ;;  %v2391_v25 = vpop.permute.xlu0 %1333 }
 0x1f5   : > { %565 = vrot.lane.b32.xlu1 %v2262_v11, %s2089_s14  ;;  %1189 = vrot.lane.b32.xlu0 %v2270_v15, %s2090_s15 }
 0x1f7   : > { %v2397_v26 = vpop.permute.xlu1 %1335  ;;  %v2399_v27 = vpop.permute.xlu0 %787 }
 0x1f9   : > { %1191 = vrot.lane.b32.xlu1 %v2262_v11, %s2090_s15  ;;  %498 = vrot.lane.b32.xlu0 %v2270_v15, %s2091_s16 }
 0x1fb   : > { %v2405_v28 = vpop.permute.xlu1 %789  ;;  %v2407_v29 = vpop.permute.xlu0 %1485 }
 0x1fd   : > { %500 = vrot.lane.b32.xlu1 %v2262_v11, %s2091_s16  ;;  %1341 = vrot.lane.b32.xlu0 %v2270_v15, %s2092_s17 }
 0x1ff   : > { %v2413_v30 = vpop.permute.xlu1 %1487  ;;  %v2415_v31 = vpop.permute.xlu0 %939 }
 0x201   : > { %1343 = vrot.lane.b32.xlu1 %v2262_v11, %s2092_s17  ;;  %795 = vrot.lane.b32.xlu0 %v2270_v15, %s2093_s18 }
 0x203   : > { %v2424_v33 = vpop.permute.xlu1 %941  ;;  %v2426_v34 = vpop.permute.xlu0 %1637 }
 0x205   : > { %797 = vrot.lane.b32.xlu1 %v2262_v11, %s2093_s18  ;;  %1493 = vrot.lane.b32.xlu0 %v2270_v15, %s2094_s19 }
 0x207   : > { %v2441_v37 = vpop.permute.xlu1 %1639  ;;  %v568_v38 = vpop.permute.xlu0 %567 }
 0x208   : > { %v580_v42 = vsel %vm579_vm3, %v556_v19, %v568_v38  ;;  %v586_v43 = vsel %vm579_vm3, %v568_v38, %v556_v19 }
 0x209   : > { %1495 = vrot.lane.b32.xlu1 %v2262_v11, %s2094_s19  ;;  %575 = vrot.lane.b32.xlu0 %v2260_v10, %s2089_s14  ;;  %v605_v56 = vmul.f32 %v2451_v40, %v586_v43  ;;  %v606_v58 = vmul.f32 %v2454_v41, %v580_v42 }
 0x20b   : > { %v570_v46 = vpop.permute.xlu1 %569  ;;  %v1194_v48 = vpop.permute.xlu0 %1193 }
 0x20c   : > { %v581_v52 = vsel %vm579_vm3, %v558_v20, %v570_v46  ;;  %v587_v53 = vsel %vm579_vm3, %v570_v46, %v558_v20  ;;  %v1206_v54 = vsel %vm1205_vm4, %v1182_v21, %v1194_v48  ;;  %v1212_v55 = vsel %vm1205_vm4, %v1194_v48, %v1182_v21  ;;  %v1901_v46 = vld [vmem:[%s3249_s6 + $0xe] sm:$0x3] }
 0x20d   : > { %v607_v60 = vmul.f32 %v2451_v40, %v587_v53  ;;  %v608_v61 = vmul.f32 %v2454_v41, %v581_v52  ;;  %577 = vrot.lane.b32.xlu1 %v2264_v13, %s2089_s14  ;;  %1201 = vrot.lane.b32.xlu0 %v2260_v10, %s2090_s15  ;;  %v1231_v1 = vmul.f32 %v2466_v44, %v1206_v54  ;;  %s1914_s14 = sshll.u32 %s3354_s25, 5 }
 0x20e   : > { %v1232_v2 = vmul.f32 %v2472_v47, %v1212_v55  ;;  %v2580_v55 = vrot.slane %v1901_v46, %v2429_v35  ;;  %s278_s26 = scalar_lea.vmem %s3250_s7, %s1914_s14 }
 0x20f   : > { %v1917_v0 = vpack.c.bf16 %v607_v60, %v605_v56  ;;  %v1196_v3 = vpop.permute.xlu1 %1195  ;;  %v503_v4 = vpop.permute.xlu0 %502  ;;  %v1915_v6 = vpack.c.bf16 %v608_v61, %v606_v58  ;;  %v2583_v56 = vrot.slane %v1901_v46, %v2432_v36 }
 0x210   : > { %v1207_v7 = vsel %vm1205_vm4, %v2381_v22, %v1196_v3  ;;  %v1213_v8 = vsel %vm1205_vm4, %v1196_v3, %v2381_v22  ;;  %v517_v9 = vsel %vm516_vm5, %v2383_v23, %v503_v4  ;;  %v523_v16 = vsel %vm516_vm5, %v503_v4, %v2383_v23 }
 0x211   : > { %v1233_v18 = vmul.f32 %v2466_v44, %v1207_v7  ;;  %v1234_v19 = vmul.f32 %v2472_v47, %v1213_v8  ;;  %v2529_v20 = vmul.f32 %v2476_v49, %v523_v16  ;;  %v2532_v21 = vmul.f32 %v2479_v50, %v517_v9  ;;  %1203 = vrot.lane.b32.xlu1 %v2264_v13, %s2090_s15 }
 0x212   : > { %1653 = vrot.lane.b32.xlu0 %v2240_v57, %s2096_s21  ;;  %1916 = vmatprep.subr.bf16.mxu0 %v1915_v6 }
 0x213   : > { %v1977_v22 = vpack.c.bf16 %v1233_v18, %v1231_v1  ;;  %1918 = vmatpush1.bf16.msra.mxu0 %v1917_v0  ;;  %v505_v23 = vpop.permute.xlu1 %504  ;;  %v1346_v12 = vpop.permute.xlu0 %1345  ;;  %v1975_v38 = vpack.c.bf16 %v1234_v19, %v1232_v2  ;;  %v1882_v1 = vld [vmem:[%s3249_s6 + $0x6] sm:$0x3] }
 0x214   : > { %v518_v42 = vsel %vm516_vm5, %v2389_v24, %v505_v23  ;;  %v524_v57 = vsel %vm516_vm5, %v505_v23, %v2389_v24  ;;  %v1358_v43 = vsel %vm1357_vm6, %v2391_v25, %v1346_v12  ;;  %v1364_v45 = vsel %vm1357_vm6, %v1346_v12, %v2391_v25  ;;  %v1906_v23 = vld [vmem:[%s3249_s6 + $0x10] sm:$0x3] }
 0x215   : > { %v2561_v48 = vmul.f32 %v2476_v49, %v524_v57  ;;  %v2564_v51 = vmul.f32 %v2479_v50, %v518_v42  ;;  %v2567_v24 = vmul.f32 %v2504_v62, %v1358_v43  ;;  %v2570_v52 = vmul.f32 %v2507_v63, %v1364_v45  ;;  %1655 = vrot.lane.b32.xlu1 %v2244_v59, %s2096_s21 }
 0x216   : > { %510 = vrot.lane.b32.xlu0 %v2260_v10, %s2091_s16  ;;  %1976 = vmatprep.subr.bf16.mxu1 %v1975_v38  ;;  %v2622_v8 = vrot.slane %v1882_v1, %v2429_v35  ;;  %v2625_v9 = vrot.slane %v1882_v1, %v2432_v36  ;;  %v2664_v45 = vrot.slane %v1906_v23, %v2429_v35 }
 0x217   : > { %1978 = vmatpush1.bf16.msra.mxu1 %v1977_v22  ;;  %v1348_v53 = vpop.permute.xlu1 %1347  ;;  %v800_v54 = vpop.permute.xlu0 %799  ;;  %v2667_v46 = vrot.slane %v1906_v23, %v2432_v36 }
 0x218   : > { %v1359_v58 = vsel %vm1357_vm6, %v2397_v26, %v1348_v53  ;;  %v1365_v60 = vsel %vm1357_vm6, %v1348_v53, %v2397_v26  ;;  %v812_v61 = vsel %vm811_vm7, %v2399_v27, %v800_v54  ;;  %v818_v0 = vsel %vm811_vm7, %v800_v54, %v2399_v27  ;;  %3280 = vst [vmem:[#allocation2_spill] sm:$0xff] %v2622_v8 }
 0x219   : > { %v2603_v2 = vmul.f32 %v2504_v62, %v1359_v58  ;;  %v2606_v3 = vmul.f32 %v2507_v63, %v1365_v60  ;;  %v2609_v26 = vmul.f32 %v2540_v14, %v818_v0  ;;  %v2612_v4 = vmul.f32 %v2543_v39, %v812_v61  ;;  %512 = vrot.lane.b32.xlu1 %v2264_v13, %s2091_s16 }
 0x21a   : > { %1353 = vrot.lane.b32.xlu0 %v2260_v10, %s2092_s17  ;;  %3281 = vst [vmem:[#allocation3_spill] sm:$0xff] %v2625_v9 }
 0x21b   : > { %v802_v6 = vpop.permute.xlu1 %801  ;;  %v1498_v7 = vpop.permute.xlu0 %1497 }
 0x21c   : > { %v813_v17 = vsel %vm811_vm7, %v2405_v28, %v802_v6  ;;  %v819_v18 = vsel %vm811_vm7, %v802_v6, %v2405_v28  ;;  %v1510_v19 = vsel %vm1509_vm8, %v2407_v29, %v1498_v7  ;;  %v1516_v22 = vsel %vm1509_vm8, %v1498_v7, %v2407_v29 }
 0x21d   : > { %v2645_v12 = vmul.f32 %v2540_v14, %v819_v18  ;;  %v2648_v38 = vmul.f32 %v2543_v39, %v813_v17  ;;  %v2651_v28 = vmul.f32 %v2580_v55, %v1510_v19  ;;  %v2654_v42 = vmul.f32 %v2583_v56, %v1516_v22  ;;  %1355 = vrot.lane.b32.xlu1 %v2264_v13, %s2092_s17 }
 0x21e   : > { %807 = vrot.lane.b32.xlu0 %v2260_v10, %s2093_s18 }
 0x21f   : > { %3282 = vst [vmem:[#allocation4_spill] sm:$0xff] %v2651_v28  ;;  %v1500_v57 = vpop.permute.xlu1 %1499  ;;  %v952_v43 = vpop.permute.xlu0 %951 }
 0x220   : > { %v1511_v54 = vsel %vm1509_vm8, %v2413_v30, %v1500_v57  ;;  %v1517_v58 = vsel %vm1509_vm8, %v1500_v57, %v2413_v30  ;;  %v964_v60 = vsel %vm963_vm9, %v2415_v31, %v952_v43  ;;  %v970_v35 = vsel %vm963_vm9, %v952_v43, %v2415_v31 }
 0x221   : > { %v2684_v36 = vmul.f32 %v2580_v55, %v1511_v54  ;;  %v2687_v61 = vmul.f32 %v2583_v56, %v1517_v58  ;;  %v2690_v0 = vmul.f32 %v2622_v8, %v970_v35  ;;  %v2693_v1 = vmul.f32 %v2625_v9, %v964_v60  ;;  %949 = vrot.lane.b32.xlu1 %v2262_v11, %s2095_s20 }
 0x222   : > { %1505 = vrot.lane.b32.xlu0 %v2260_v10, %s2094_s19 }
 0x223   : > { %3283 = vst [vmem:[#allocation5_spill] sm:$0xff] %v2684_v36  ;;  %3284 = vst [vmem:[#allocation6_spill] sm:$0xff] %v2690_v0  ;;  %v954_v31 = vpop.permute.xlu1 %953  ;;  %v1650_v6 = vpop.permute.xlu0 %1649 }
 0x224   : > { %3285 = vst [vmem:[#allocation7_spill] sm:$0xff] %v2693_v1  ;;  %v965_v17 = vsel %vm963_vm9, %v2424_v33, %v954_v31  ;;  %v971_v18 = vsel %vm963_vm9, %v954_v31, %v2424_v33  ;;  %v1662_v19 = vsel %vm1661_vm10, %v2426_v34, %v1650_v6  ;;  %v1668_v22 = vsel %vm1661_vm10, %v1650_v6, %v2426_v34 }
 0x225   : > { %v2716_v23 = vmul.f32 %v2622_v8, %v971_v18  ;;  %v2719_v57 = vmul.f32 %v2625_v9, %v965_v17  ;;  %v2722_v43 = vmul.f32 %v2664_v45, %v1662_v19  ;;  %v2725_v54 = vmul.f32 %v2667_v46, %v1668_v22  ;;  %809 = vrot.lane.b32.xlu1 %v2264_v13, %s2093_s18 }
 0x226   : > { %947 = vrot.lane.b32.xlu0 %v2270_v15, %s2095_s20 }
 0x227   : > { %3286 = vst [vmem:[#allocation8_spill] sm:$0xff] %v2716_v23  ;;  %3287 = vst [vmem:[#allocation9_spill] sm:$0xff] %v2719_v57  ;;  %v1652_v34 = vpop.permute.xlu1 %1651  ;;  %v560_v58 = vpop.permute.xlu0 %559 }
 0x228   : > { %3288 = vst [vmem:[#allocation10_spill] sm:$0xff] %v2722_v43  ;;  %3289 = vst [vmem:[#allocation11_spill] sm:$0xff] %v2725_v54  ;;  %v1663_v35 = vsel %vm1661_vm10, %v2441_v37, %v1652_v34  ;;  %v1669_v31 = vsel %vm1661_vm10, %v1652_v34, %v2441_v37 }
 0x229   : > { %v2742_v6 = vmul.f32 %v2664_v45, %v1663_v35  ;;  %v2745_v17 = vmul.f32 %v2667_v46, %v1669_v31  ;;  %1507 = vrot.lane.b32.xlu1 %v2264_v13, %s2094_s19 }
 0x22a   : > { %959 = vrot.lane.b32.xlu0 %v2260_v10, %s2095_s20 }
 0x22b   : > { %3290 = vst [vmem:[#allocation12_spill] sm:$0xff] %v2742_v6  ;;  %3291 = vst [vmem:[#allocation13_spill] sm:$0xff] %v2745_v17  ;;  %v562_v19 = vpop.permute.xlu1 %561  ;;  %v1186_v22 = vpop.permute.xlu0 %1185 }
 0x22d   : > { %1647 = vrot.lane.b32.xlu1 %v2262_v11, %s2096_s21 }
 0x22e   : > { %1645 = vrot.lane.b32.xlu0 %v2270_v15, %s2096_s21 }
 0x22f   : > { %v1188_v34 = vpop.permute.xlu1 %1187  ;;  %v495_v35 = vpop.permute.xlu0 %494 }
 0x231   : > { %961 = vrot.lane.b32.xlu1 %v2264_v13, %s2095_s20 }
 0x232   : > { %1657 = vrot.lane.b32.xlu0 %v2260_v10, %s2096_s21 }
 0x233   : > { %v497_v31 = vpop.permute.xlu1 %496  ;;  %v1338_v18 = vpop.permute.xlu0 %1337 }
 0x235   : > { %1659 = vrot.lane.b32.xlu1 %v2264_v13, %s2096_s21 }
 0x237   : > { %v1340_v37 = vpop.permute.xlu1 %1339  ;;  %v792_v33 = vpop.permute.xlu0 %791 }
 0x23b   : > { %v2765_v60 = vpop.permute.xlu1 %793  ;;  %v2767_v11 = vpop.permute.xlu0 %1489 }
 0x23f   : > { %v2769_v15 = vpop.permute.xlu1 %1491  ;;  %v2771_v30 = vpop.permute.xlu0 %943 }
 0x243   : > { %v2773_v7 = vpop.permute.xlu1 %945  ;;  %v2775_v29 = vpop.permute.xlu0 %1641 }
 0x247   : > { %v2777_v10 = vpop.permute.xlu1 %1643  ;;  %v572_v53 = vpop.permute.xlu0 %571 }
 0x248   : > { %v582_v13 = vsel %vm579_vm3, %v560_v58, %v572_v53  ;;  %v588_v27 = vsel %vm579_vm3, %v572_v53, %v560_v58 }
 0x249   : > { %v609_v54 = vmul.f32 %v2451_v40, %v588_v27  ;;  %v610_v17 = vmul.f32 %v2454_v41, %v582_v13 }
 0x24b   : > { %v574_v5 = vpop.permute.xlu1 %573  ;;  %v1198_v16 = vpop.permute.xlu0 %1197 }
 0x24c   : > { %v583_v25 = vsel %vm579_vm3, %v562_v19, %v574_v5  ;;  %v589_v59 = vsel %vm579_vm3, %v574_v5, %v562_v19  ;;  %v1208_v43 = vsel %vm1205_vm4, %v1186_v22, %v1198_v16  ;;  %v1214_v6 = vsel %vm1205_vm4, %v1198_v16, %v1186_v22 }
 0x24d   : > { %v611_v53 = vmul.f32 %v2451_v40, %v589_v59  ;;  %v612_v58 = vmul.f32 %v2454_v41, %v583_v25  ;;  %v1235_v23 = vmul.f32 %v2466_v44, %v1208_v43  ;;  %v1236_v1 = vmul.f32 %v2472_v47, %v1214_v6 }
 0x24f   : > { %v1921_v0 = vpack.c.bf16 %v611_v53, %v609_v54  ;;  %v1200_v5 = vpop.permute.xlu1 %1199  ;;  %v507_v19 = vpop.permute.xlu0 %506  ;;  %v1919_v57 = vpack.c.bf16 %v612_v58, %v610_v17 }
 0x250   : > { %v1209_v28 = vsel %vm1205_vm4, %v1188_v34, %v1200_v5  ;;  %v1215_v27 = vsel %vm1205_vm4, %v1200_v5, %v1188_v34  ;;  %v519_v16 = vsel %vm516_vm5, %v495_v35, %v507_v19  ;;  %v525_v25 = vsel %vm516_vm5, %v507_v19, %v495_v35 }
 0x251   : > { %v1237_v59 = vmul.f32 %v2466_v44, %v1209_v28  ;;  %v1238_v43 = vmul.f32 %v2472_v47, %v1215_v27  ;;  %v2808_v54 = vmul.f32 %v2476_v49, %v525_v25  ;;  %v2811_v6 = vmul.f32 %v2479_v50, %v519_v16  ;;  %1920 = vmatprep.subr.bf16.mxu0 %v1919_v57 }
 0x252   : > { %1922 = vmatpush1.bf16.msra.mxu0 %v1921_v0 }
 0x253   : > { %v1981_v17 = vpack.c.bf16 %v1237_v59, %v1235_v23  ;;  %v509_v22 = vpop.permute.xlu1 %508  ;;  %v1350_v34 = vpop.permute.xlu0 %1349  ;;  %v1979_v13 = vpack.c.bf16 %v1238_v43, %v1236_v1 }
 0x254   : > { %v520_v53 = vsel %vm516_vm5, %v497_v31, %v509_v22  ;;  %v526_v28 = vsel %vm516_vm5, %v509_v22, %v497_v31  ;;  %v1360_v35 = vsel %vm1357_vm6, %v1338_v18, %v1350_v34  ;;  %v1366_v58 = vsel %vm1357_vm6, %v1350_v34, %v1338_v18 }
 0x255   : > { %v2822_v5 = vmul.f32 %v2476_v49, %v526_v28  ;;  %v2825_v0 = vmul.f32 %v2479_v50, %v520_v53  ;;  %v2828_v1 = vmul.f32 %v2504_v62, %v1360_v35  ;;  %v2831_v23 = vmul.f32 %v2507_v63, %v1366_v58  ;;  %1980 = vmatprep.subr.bf16.mxu1 %v1979_v13 }
 0x256   : > { %1982 = vmatpush1.bf16.msra.mxu1 %v1981_v17 }
 0x257   : > { %v1352_v31 = vpop.permute.xlu1 %1351  ;;  %v804_v19 = vpop.permute.xlu0 %803 }
 0x258   : > { %v1361_v27 = vsel %vm1357_vm6, %v1340_v37, %v1352_v31  ;;  %v1367_v16 = vsel %vm1357_vm6, %v1352_v31, %v1340_v37  ;;  %v814_v25 = vsel %vm811_vm7, %v792_v33, %v804_v19  ;;  %v820_v59 = vsel %vm811_vm7, %v804_v19, %v792_v33 }
 0x259   : > { %v2846_v43 = vmul.f32 %v2504_v62, %v1361_v27  ;;  %v2849_v17 = vmul.f32 %v2507_v63, %v1367_v16  ;;  %v2852_v22 = vmul.f32 %v2540_v14, %v820_v59  ;;  %v2855_v34 = vmul.f32 %v2543_v39, %v814_v25 }
 0x25b   : > { %3292 = vst [vmem:[#allocation14_spill] sm:$0xff] %v2852_v22  ;;  %3293 = vst [vmem:[#allocation15_spill] sm:$0xff] %v2855_v34  ;;  %v806_v13 = vpop.permute.xlu1 %805  ;;  %v1502_v53 = vpop.permute.xlu0 %1501 }
 0x25c   : > { %v815_v28 = vsel %vm811_vm7, %v2765_v60, %v806_v13  ;;  %v821_v35 = vsel %vm811_vm7, %v806_v13, %v2765_v60  ;;  %v1512_v58 = vsel %vm1509_vm8, %v2767_v11, %v1502_v53  ;;  %v1518_v31 = vsel %vm1509_vm8, %v1502_v53, %v2767_v11 }
 0x25d   : > { %v2874_v19 = vmul.f32 %v2540_v14, %v821_v35  ;;  %v2877_v27 = vmul.f32 %v2543_v39, %v815_v28  ;;  %v2880_v16 = vmul.f32 %v2580_v55, %v1512_v58  ;;  %v2883_v25 = vmul.f32 %v2583_v56, %v1518_v31 }
 0x25f   : > { %3294 = vst [vmem:[#allocation16_spill] sm:$0xff] %v2874_v19  ;;  %3295 = vst [vmem:[#allocation17_spill] sm:$0xff] %v2877_v27  ;;  %v1504_v59 = vpop.permute.xlu1 %1503  ;;  %v956_v13 = vpop.permute.xlu0 %955 }
 0x260   : > { %3296 = vst [vmem:[#allocation18_spill] sm:$0xff] %v2880_v16  ;;  %3297 = vst [vmem:[#allocation19_spill] sm:$0xff] %v2883_v25  ;;  %v1513_v53 = vsel %vm1509_vm8, %v2769_v15, %v1504_v59  ;;  %v1519_v28 = vsel %vm1509_vm8, %v1504_v59, %v2769_v15  ;;  %v966_v35 = vsel %vm963_vm9, %v2771_v30, %v956_v13 }
 0x261   : > { %v972_v58 = vsel %vm963_vm9, %v956_v13, %v2771_v30  ;;  %v2902_v31 = vmul.f32 %v2580_v55, %v1513_v53  ;;  %v2905_v60 = vmul.f32 %v2583_v56, %v1519_v28  ;;  %v2911_v37 = vmul.f32 %v2625_v9, %v966_v35 }
 0x262   : > { %v2908_v11 = vmul.f32 %v2622_v8, %v972_v58 }
 0x263   : > { %3298 = vst [vmem:[#allocation20_spill] sm:$0xff] %v2902_v31  ;;  %3299 = vst [vmem:[#allocation21_spill] sm:$0xff] %v2905_v60  ;;  %v958_v59 = vpop.permute.xlu1 %957  ;;  %v564_v33 = vpop.permute.xlu0 %563 }
 0x264   : > { %3300 = vst [vmem:[#allocation22_spill] sm:$0xff] %v2908_v11  ;;  %3301 = vst [vmem:[#allocation23_spill] sm:$0xff] %v2911_v37  ;;  %v967_v13 = vsel %vm963_vm9, %v2773_v7, %v958_v59  ;;  %v973_v53 = vsel %vm963_vm9, %v958_v59, %v2773_v7 }
 0x265   : > { %v2924_v28 = vmul.f32 %v2622_v8, %v973_v53  ;;  %v2927_v35 = vmul.f32 %v2625_v9, %v967_v13 }
 0x267   : > { %3302 = vst [vmem:[#allocation24_spill] sm:$0xff] %v2924_v28  ;;  %3303 = vst [vmem:[#allocation25_spill] sm:$0xff] %v2927_v35  ;;  %v566_v15 = vpop.permute.xlu1 %565  ;;  %v1190_v57 = vpop.permute.xlu0 %1189 }
 0x26b   : > { %v1192_v18 = vpop.permute.xlu1 %1191  ;;  %v499_v16 = vpop.permute.xlu0 %498 }
 0x26f   : > { %v501_v31 = vpop.permute.xlu1 %500  ;;  %v2933_v25 = vpop.permute.xlu0 %1341 }
 0x273   : > { %v2935_v7 = vpop.permute.xlu1 %1343  ;;  %v2937_v59 = vpop.permute.xlu0 %795 }
 0x277   : > { %v2939_v53 = vpop.permute.xlu1 %797  ;;  %v2941_v13 = vpop.permute.xlu0 %1493 }
 0x27b   : > { %v2943_v9 = vpop.permute.xlu1 %1495  ;;  %v576_v58 = vpop.permute.xlu0 %575 }
 0x27c   : > { %3304 = vst [vmem:[#allocation26_spill] sm:$0xff] %v2943_v9  ;;  %v584_v11 = vsel %vm579_vm3, %v564_v33, %v576_v58  ;;  %v590_v30 = vsel %vm579_vm3, %v576_v58, %v564_v33 }
 0x27d   : > { %v613_v37 = vmul.f32 %v2451_v40, %v590_v30  ;;  %v614_v35 = vmul.f32 %v2454_v41, %v584_v11 }
 0x27f   : > { %v578_v28 = vpop.permute.xlu1 %577  ;;  %v1202_v22 = vpop.permute.xlu0 %1201 }
 0x280   : > { %v585_v8 = vsel %vm579_vm3, %v566_v15, %v578_v28  ;;  %v591_v60 = vsel %vm579_vm3, %v578_v28, %v566_v15  ;;  %v1210_v36 = vsel %vm1205_vm4, %v1190_v57, %v1202_v22  ;;  %v1216_v33 = vsel %vm1205_vm4, %v1202_v22, %v1190_v57 }
 0x281   : > { %v615_v9 = vmul.f32 %v2451_v40, %v591_v60  ;;  %v616_v19 = vmul.f32 %v2454_v41, %v585_v8  ;;  %v1239_v34 = vmul.f32 %v2466_v44, %v1210_v36  ;;  %v1240_v27 = vmul.f32 %v2472_v47, %v1216_v33 }
 0x283   : > { %v1925_v30 = vpack.c.bf16 %v615_v9, %v613_v37  ;;  %v1204_v58 = vpop.permute.xlu1 %1203  ;;  %v1923_v11 = vpack.c.bf16 %v616_v19, %v614_v35  ;;  %v1871_v19 = vld [vmem:[%s3248_s5 + $0x10] sm:$0xff] }
 0x284   : > { %v1211_v15 = vsel %vm1205_vm4, %v1192_v18, %v1204_v58  ;;  %v1217_v40 = vsel %vm1205_vm4, %v1204_v58, %v1192_v18  ;;  %v1654_v41 = vpop.permute.xlu0 %1653 }
 0x285   : > { %v1241_v8 = vmul.f32 %v2466_v44, %v1211_v15  ;;  %v1242_v60 = vmul.f32 %v2472_v47, %v1217_v40  ;;  %v1664_v9 = vsel %vm1661_vm10, %v2775_v29, %v1654_v41  ;;  %v1670_v36 = vsel %vm1661_vm10, %v1654_v41, %v2775_v29  ;;  %1924 = vmatprep.subr.bf16.mxu0 %v1923_v11  ;;  %v1872_v40 = vld [vmem:[%s3248_s5 + $0x18] sm:$0xff] }
 0x286   : > { %v2976_v57 = vmul.f32 %v2664_v45, %v1664_v9  ;;  %v2979_v22 = vmul.f32 %v2667_v46, %v1670_v36  ;;  %1926 = vmatpush1.bf16.msra.mxu0 %v1925_v30  ;;  %v3305_v47 = vpack.c.bf16 %v2564_v51, %v2532_v21  ;;  %v3306_v11 = vpack.c.bf16 %v2561_v48, %v2529_v20 }
 0x287   : > { %v1985_v18 = vpack.c.bf16 %v1241_v8, %v1239_v34  ;;  %v1656_v44 = vpop.permute.xlu1 %1655  ;;  %v1983_v37 = vpack.c.bf16 %v1242_v60, %v1240_v27  ;;  %v3307_v15 = vpack.c.bf16 %v2606_v3, %v2570_v52  ;;  %v3308_v20 = vpack.c.bf16 %v2825_v0, %v2811_v6 }
 0x288   : > { %1928 = vmatprep.subr.bf16.mxu0 %v3305_v47  ;;  %v1665_v29 = vsel %vm1661_vm10, %v2777_v10, %v1656_v44  ;;  %v1671_v28 = vsel %vm1661_vm10, %v1656_v44, %v2777_v10  ;;  %v511_v35 = vpop.permute.xlu0 %510  ;;  %v1892_v10 = vld [vmem:[%s3248_s5 + $0x50] sm:$0xff]  ;;  %v3309_v52 = vmov 0.0  }
 0x289   : > { %v2994_v34 = vmul.f32 %v2664_v45, %v1665_v29  ;;  %v2997_v21 = vmul.f32 %v2667_v46, %v1671_v28  ;;  %v521_v51 = vsel %vm516_vm5, %v499_v16, %v511_v35  ;;  %v527_v27 = vsel %vm516_vm5, %v511_v35, %v499_v16  ;;  %1984 = vmatprep.subr.bf16.mxu1 %v1983_v37 }
 0x28a   : > { %v549_v33 = vmul.f32 %v2476_v49, %v527_v27  ;;  %v550_v30 = vmul.f32 %v2479_v50, %v521_v51  ;;  %1873 = vmatmul.mubr.msk.f32.vlgmr.msra.gmra.mrb[12].mxu0 %vm620_vm2, %v1871_v19  ;;  %1986 = vmatpush1.bf16.msra.mxu1 %v1985_v18  ;;  %v3313_v28 = vpack.c.bf16 %v2846_v43, %v2828_v1  ;;  %v553_v51 = vld [vmem:[%s3248_s5] sm:$0xff] }
 0x28b   : > { %v2017_v58 = vpack.c.bf16 %v2994_v34, %v2976_v57  ;;  %1930 = vmatpush1.bf16.msra.mxu0 %v3306_v11  ;;  %v513_v16 = vpop.permute.xlu1 %512  ;;  %1988 = vmatprep.subr.bf16.mxu1 %v3307_v15  ;;  %v2015_v41 = vpack.c.bf16 %v2997_v21, %v2979_v22  ;;  %v554_v11 = vld [vmem:[%s3248_s5 + $0x8] sm:$0xff]  ;;  %v1883_v22 = vld [vmem:[%s3248_s5 + $0x30] sm:$0xff] }
 0x28c   : > { %v522_v8 = vsel %vm516_vm5, %v501_v31, %v513_v16  ;;  %v528_v60 = vsel %vm516_vm5, %v513_v16, %v501_v31  ;;  %1932 = vmatprep.subr.bf16.mxu0 %v3308_v20  ;;  %v1354_v48 = vpop.permute.xlu0 %1353  ;;  %697 = vmatprep.mubr.f32.mxu0 %v3309_v52  ;;  %v3310_v31 = vpack.c.bf16 %v2603_v2, %v2567_v24  ;;  %v3321_v20 = vld [vmem:[#allocation4_spill] sm:$0xff]  ;;  %v1908_v57 = vld [vmem:[%s3248_s5 + $0x88] sm:$0xff] }
 0x28d   : > { %v551_v3 = vmul.f32 %v2476_v49, %v528_v60  ;;  %v552_v9 = vmul.f32 %v2479_v50, %v522_v8  ;;  %v1362_v36 = vsel %vm1357_vm6, %v2933_v25, %v1354_v48  ;;  %v1368_v18 = vsel %vm1357_vm6, %v1354_v48, %v2933_v25  ;;  %1894 = vmatmul.mubr.msk.f32.vlgmr.msra.gmra.mrb[0].mxu1 %vm620_vm2, %v1892_v10  ;;  %v3320_v60 = vld [vmem:[#allocation5_spill] sm:$0xff] }
 0x28e   : > { %v1391_v6 = vmul.f32 %v2504_v62, %v1362_v36  ;;  %v1392_v0 = vmul.f32 %v2507_v63, %v1368_v18  ;;  %1990 = vmatpush1.bf16.msra.mxu1 %v3310_v31  ;;  %1874 = vmatmul.mubr.msk.f32.gmra.mrb[14].mxu0 %vm620_vm2, %v1872_v40  ;;  %v3311_v50 = vpack.c.bf16 %v2822_v5, %v2808_v54  ;;  %v1893_v54 = vld [vmem:[%s3248_s5 + $0x58] sm:$0xff] }
 0x28f   : > { %v1937_v49 = vpack.c.bf16 %v551_v3, %v549_v33  ;;  %v1356_v44 = vpop.permute.xlu1 %1355  ;;  %v3312_v25 = vpack.c.bf16 %v2849_v17, %v2831_v23  ;;  %v1935_v47 = vpack.c.bf16 %v552_v9, %v550_v30  ;;  %774 = vmatprep.mubr.f32.mxu0 %v3309_v52  ;;  %1322 = vmatprep.mubr.f32.mxu1 %v3309_v52  ;;  %v3317_v40 = vld [vmem:[#allocation17_spill] sm:$0xff]  ;;  %v3323_v3 = vld [vmem:[#allocation16_spill] sm:$0xff]  ;;  %v3324_v9 = vld [vmem:[#allocation14_spill] sm:$0xff] }
 0x290   : > { %1934 = vmatpush1.bf16.msra.mxu0 %v3311_v50  ;;  %v1363_v37 = vsel %vm1357_vm6, %v2935_v7, %v1356_v44  ;;  %v1369_v24 = vsel %vm1357_vm6, %v1356_v44, %v2935_v7  ;;  %v808_v2 = vpop.permute.xlu0 %807  ;;  %v3322_v48 = vpack.c.bf16 %v3320_v60, %v3321_v20  ;;  %v3325_v36 = vpack.c.bf16 %v3323_v3, %v3324_v9  ;;  %v3348_v3 = vld [vmem:[#allocation10_spill] sm:$0xff] }
 0x291   : > { %1992 = vmatprep.subr.bf16.mxu1 %v3312_v25  ;;  %v1393_v5 = vmul.f32 %v2504_v62, %v1363_v37  ;;  %v1394_v23 = vmul.f32 %v2507_v63, %v1369_v24  ;;  %v816_v17 = vsel %vm811_vm7, %v2937_v59, %v808_v2  ;;  %v822_v7 = vsel %vm811_vm7, %v808_v2, %v2937_v59  ;;  %v1898_v25 = vld [vmem:[%s3248_s5 + $0x68] sm:$0xff] }
 0x292   : > { %1936 = vmatprep.subr.bf16.mxu0 %v1935_v47  ;;  %v845_v19 = vmul.f32 %v2540_v14, %v822_v7  ;;  %v846_v29 = vmul.f32 %v2543_v39, %v816_v17  ;;  %1994 = vmatpush1.bf16.msra.mxu1 %v3313_v28  ;;  %v3314_v59 = vpack.c.bf16 %v2648_v38, %v2612_v4  ;;  %v1897_v4 = vld [vmem:[%s3248_s5 + $0x60] sm:$0xff]  ;;  %v3332_v7 = vld [vmem:[#allocation20_spill] sm:$0xff] }
 0x293   : > { %v1997_v62 = vpack.c.bf16 %v1393_v5, %v1391_v6  ;;  %v3075_v63 = vpop.permute.xlu1 %949  ;;  %v1995_v35 = vpack.c.bf16 %v1394_v23, %v1392_v0  ;;  %1895 = vmatmul.mubr.msk.f32.gmra.mrb[2].mxu1 %vm620_vm2, %v1893_v54  ;;  %v3315_v38 = vpack.c.bf16 %v2645_v12, %v2609_v26  ;;  %v3318_v26 = vld [vmem:[#allocation15_spill] sm:$0xff]  ;;  %v3326_v6 = vld [vmem:[#allocation21_spill] sm:$0xff]  ;;  %v3330_v54 = vld [vmem:[#allocation2_spill] sm:$0xff] }
 0x294   : > { %1938 = vmatpush1.bf16.msra.mxu0 %v1937_v49  ;;  %v1506_v27 = vpop.permute.xlu0 %1505  ;;  %1468 = vmatprep.mubr.f32.mxu1 %v3309_v52  ;;  %v3319_v12 = vpack.c.bf16 %v3317_v40, %v3318_v26  ;;  %v3327_v0 = vld [vmem:[#allocation19_spill] sm:$0xff]  ;;  %v3344_v40 = vld [vmem:[#allocation25_spill] sm:$0xff] }
 0x295   : > { %1940 = vmatprep.subr.bf16.mxu0 %v3314_v59  ;;  %v1514_v1 = vsel %vm1509_vm8, %v2941_v13, %v1506_v27  ;;  %v1520_v43 = vsel %vm1509_vm8, %v1506_v27, %v2941_v13  ;;  %1996 = vmatprep.subr.bf16.mxu1 %v1995_v35  ;;  %v3316_v13 = vpack.c.bf16 %v2687_v61, %v2654_v42  ;;  %v3331_v23 = vld [vmem:[#allocation3_spill] sm:$0xff]  ;;  %v3335_v35 = vld [vmem:[#allocation9_spill] sm:$0xff] }
 0x296   : > { %v1543_v33 = vmul.f32 %v2580_v55, %v1514_v1  ;;  %v1544_v30 = vmul.f32 %v2583_v56, %v1520_v43  ;;  %1998 = vmatpush1.bf16.msra.mxu1 %v1997_v62  ;;  %v3328_v31 = vpack.c.bf16 %v3326_v6, %v3327_v0  ;;  %v1902_v1 = vld [vmem:[%s3248_s5 + $0x70] sm:$0xff]  ;;  %v3345_v26 = vld [vmem:[#allocation23_spill] sm:$0xff]  ;;  %v3351_v0 = vld [vmem:[#allocation22_spill] sm:$0xff] }
 0x297   : > { %1875 = vmatmul.mubr.msk.f32.vlgmr.msra.gmra.mrb[12].mxu0 %vm620_vm2, %v553_v51  ;;  %v810_v10 = vpop.permute.xlu1 %809  ;;  %2000 = vmatprep.subr.bf16.mxu1 %v3316_v13  ;;  %v3336_v51 = vld [vmem:[#allocation7_spill] sm:$0xff]  ;;  %v3338_v43 = vld [vmem:[#allocation8_spill] sm:$0xff] }
 0x298   : > { %1942 = vmatpush1.bf16.msra.mxu0 %v3315_v38  ;;  %v817_v16 = vsel %vm811_vm7, %v2939_v53, %v810_v10  ;;  %v823_v15 = vsel %vm811_vm7, %v810_v10, %v2939_v53  ;;  %v948_v8 = vpop.permute.xlu0 %947  ;;  %780 = vmatprep.mubr.f32.mxu0 %v3309_v52  ;;  %v3337_v59 = vpack.c.bf16 %v3335_v35, %v3336_v51  ;;  %v3341_v38 = vld [vmem:[#allocation13_spill] sm:$0xff]  ;;  %v3342_v10 = vld [vmem:[#allocation11_spill] sm:$0xff]  ;;  %v3350_v6 = vld [vmem:[#allocation24_spill] sm:$0xff] }
 0x299   : > { %1944 = vmatprep.subr.bf16.mxu0 %v3319_v12  ;;  %v847_v42 = vmul.f32 %v2540_v14, %v823_v15  ;;  %v848_v61 = vmul.f32 %v2543_v39, %v817_v16  ;;  %1899 = vmatmul.mubr.msk.f32.vlgmr.msra.gmra.mrb[0].mxu1 %vm620_vm2, %v1897_v4  ;;  %v3329_v39 = vld [vmem:[#allocation26_spill] sm:$0xff]  ;;  %v3343_v13 = vpack.c.bf16 %v3341_v38, %v3342_v10 }
 0x29a   : > { %2002 = vmatpush1.bf16.msra.mxu1 %v3322_v48  ;;  %1474 = vmatprep.mubr.f32.mxu1 %v3309_v52  ;;  %v3346_v12 = vpack.c.bf16 %v3344_v40, %v3345_v26 }
 0x29b   : > { %1876 = vmatmul.mubr.msk.f32.gmra.mrb[14].mxu0 %vm620_vm2, %v554_v11  ;;  %v1949_v53 = vpack.c.bf16 %v847_v42, %v845_v19  ;;  %v1508_v18 = vpop.permute.xlu1 %1507  ;;  %2004 = vmatprep.subr.bf16.mxu1 %v3328_v31  ;;  %v1947_v14 = vpack.c.bf16 %v848_v61, %v846_v29  ;;  %v3333_v19 = vld [vmem:[#allocation18_spill] sm:$0xff]  ;;  %v1879_v11 = vld [vmem:[%s3248_s5 + $0x28] sm:$0xff]  ;;  %v3352_v31 = vpack.c.bf16 %v3350_v6, %v3351_v0 }
 0x29c   : > { %1946 = vmatpush1.bf16.msra.mxu0 %v3325_v36  ;;  %v1515_v49 = vsel %vm1509_vm8, %v3329_v39, %v1508_v18  ;;  %v1521_v50 = vsel %vm1509_vm8, %v1508_v18, %v3329_v39  ;;  %v960_v44 = vpop.permute.xlu0 %959  ;;  %922 = vmatprep.mubr.f32.mxu0 %v3309_v52  ;;  %v3334_v29 = vpack.c.bf16 %v3332_v7, %v3333_v19  ;;  %v1903_v36 = vld [vmem:[%s3248_s5 + $0x78] sm:$0xff] }
 0x29d   : > { %v1545_v47 = vmul.f32 %v2580_v55, %v1515_v49  ;;  %v1546_v37 = vmul.f32 %v2583_v56, %v1521_v50  ;;  %v968_v24 = vsel %vm963_vm9, %v948_v8, %v960_v44  ;;  %v974_v2 = vsel %vm963_vm9, %v960_v44, %v948_v8  ;;  %1948 = vmatprep.subr.bf16.mxu0 %v1947_v14  ;;  %v1878_v56 = vld [vmem:[%s3248_s5 + $0x20] sm:$0xff] }
 0x29e   : > { %v997_v5 = vmul.f32 %v3330_v54, %v974_v2  ;;  %v998_v17 = vmul.f32 %v3331_v23, %v968_v24  ;;  %2006 = vmatpush1.bf16.msra.mxu1 %v3334_v29 }
 0x29f   : > { %v2009_v28 = vpack.c.bf16 %v1545_v47, %v1543_v33  ;;  %v1648_v55 = vpop.permute.xlu1 %1647  ;;  %v2007_v62 = vpack.c.bf16 %v1546_v37, %v1544_v30  ;;  %1900 = vmatmul.mubr.msk.f32.gmra.mrb[2].mxu1 %vm620_vm2, %v1898_v25  ;;  %v3339_v33 = vld [vmem:[#allocation6_spill] sm:$0xff] }
 0x2a0   : > { %1950 = vmatpush1.bf16.msra.mxu0 %v1949_v53  ;;  %v1646_v27 = vpop.permute.xlu0 %1645  ;;  %1620 = vmatprep.mubr.f32.mxu1 %v3309_v52  ;;  %v3340_v30 = vpack.c.bf16 %v3338_v43, %v3339_v33  ;;  %v3347_v53 = vld [vmem:[#allocation12_spill] sm:$0xff]  ;;  %v2077_v47 = vld [vmem:[%s2185_s22] sm:$0xff] }
 0x2a1   : > { %1952 = vmatprep.subr.bf16.mxu0 %v3337_v59  ;;  %2008 = vmatprep.subr.bf16.mxu1 %v2007_v62  ;;  %v3349_v9 = vpack.c.bf16 %v3347_v53, %v3348_v3  ;;  %v1794_v37 = vcombine.high %v2077_v47, %v2077_v47 }
 0x2a2   : > { %2010 = vmatpush1.bf16.msra.mxu1 %v2009_v28 }
 0x2a3   : > { %1880 = vmatmul.mubr.msk.f32.vlgmr.msra.gmra.mrb[12].mxu0 %vm620_vm2, %v1878_v56  ;;  %v962_v4 = vpop.permute.xlu1 %961  ;;  %2012 = vmatprep.subr.bf16.mxu1 %v3343_v13 }
 0x2a4   : > { %1954 = vmatpush1.bf16.msra.mxu0 %v3340_v30  ;;  %v969_v16 = vsel %vm963_vm9, %v3075_v63, %v962_v4  ;;  %v975_v15 = vsel %vm963_vm9, %v962_v4, %v3075_v63  ;;  %v1658_v8 = vpop.permute.xlu0 %1657  ;;  %928 = vmatprep.mubr.f32.mxu0 %v3309_v52 }
 0x2a5   : > { %1956 = vmatprep.subr.bf16.mxu0 %v3346_v12  ;;  %v999_v42 = vmul.f32 %v3330_v54, %v975_v15  ;;  %v1000_v61 = vmul.f32 %v3331_v23, %v969_v16  ;;  %v1666_v60 = vsel %vm1661_vm10, %v1646_v27, %v1658_v8  ;;  %v1672_v20 = vsel %vm1661_vm10, %v1658_v8, %v1646_v27 }
 0x2a6   : > { %1904 = vmatmul.mubr.msk.f32.vlgmr.msra.gmra.mrb[0].mxu1 %vm620_vm2, %v1902_v1  ;;  %v1695_v63 = vmul.f32 %v2664_v45, %v1666_v60  ;;  %v1696_v48 = vmul.f32 %v2667_v46, %v1672_v20 }
 0x2a7   : > { %2014 = vmatpush1.bf16.msra.mxu1 %v3349_v9  ;;  %1881 = vmatmul.mubr.msk.f32.gmra.mrb[14].mxu0 %vm620_vm2, %v1879_v11  ;;  %v1961_v18 = vpack.c.bf16 %v999_v42, %v997_v5  ;;  %v1660_v14 = vpop.permute.xlu1 %1659  ;;  %v1959_v39 = vpack.c.bf16 %v1000_v61, %v998_v17 }
 0x2a8   : > { %1958 = vmatpush1.bf16.msra.mxu0 %v3352_v31  ;;  %2016 = vmatprep.subr.bf16.mxu1 %v2015_v41  ;;  %v1667_v49 = vsel %vm1661_vm10, %v1648_v55, %v1660_v14  ;;  %v1673_v50 = vsel %vm1661_vm10, %v1660_v14, %v1648_v55 }
 0x2a9   : > { %1074 = vmatprep.mubr.f32.mxu0 %v3309_v52  ;;  %1626 = vmatprep.mubr.f32.mxu1 %v3309_v52  ;;  %v1697_v44 = vmul.f32 %v2664_v45, %v1667_v49  ;;  %v1698_v25 = vmul.f32 %v2667_v46, %v1673_v50  ;;  %v1907_v45 = vld [vmem:[%s3248_s5 + $0x80] sm:$0xff]  ;;  %v1884_v46 = vld [vmem:[%s3248_s5 + $0x38] sm:$0xff] }
 0x2aa   : > { %1960 = vmatprep.subr.bf16.mxu0 %v1959_v39  ;;  %1905 = vmatmul.mubr.msk.f32.gmra.mrb[2].mxu1 %vm620_vm2, %v1903_v36 }
 0x2ab   : > { %2018 = vmatpush1.bf16.msra.mxu1 %v2017_v58  ;;  %1772 = vmatprep.mubr.f32.mxu1 %v3309_v52  ;;  %v2021_v32 = vpack.c.bf16 %v1697_v44, %v1695_v63  ;;  %v2019_v21 = vpack.c.bf16 %v1698_v25, %v1696_v48 }
 0x2ac   : > { %1962 = vmatpush1.bf16.msra.mxu0 %v1961_v18 }
 0x2ad   : > { %2020 = vmatprep.subr.bf16.mxu1 %v2019_v21 }
 0x2af   : > { %1885 = vmatmul.mubr.msk.f32.vlgmr.msra.gmra.mrb[12].mxu0 %vm620_vm2, %v1883_v22  ;;  %2022 = vmatpush1.bf16.msra.mxu1 %v2021_v32 }
 0x2b0   : > { %1080 = vmatprep.mubr.f32.mxu0 %v3309_v52 }
 0x2b2   : > { %1909 = vmatmul.mubr.msk.f32.vlgmr.msra.gmra.mrb[0].mxu1 %vm620_vm2, %v1907_v45 }
 0x2b3   : > { %1886 = vmatmul.mubr.msk.f32.gmra.mrb[14].mxu0 %vm620_vm2, %v1884_v46  ;;  %1778 = vmatprep.mubr.f32.mxu1 %v3309_v52 }
 0x2b6   : > { %1910 = vmatmul.mubr.msk.f32.gmra.mrb[2].mxu1 %vm620_vm2, %v1908_v57 }
 0x382   : > { %v1076_v34 = vpop.f32.mrb[12].mxu0 }
 0x383   : > { %v1078_v58 = vpop.f32.mrb[13].mxu0 }
 0x385   : > { %v1774_v41 = vpop.f32.mrb[0].mxu1 }
 0x386   : > { %v1082_v24 = vpop.f32.mrb[14].mxu0  ;;  %v2023_v2 = vadd.f32 %v1774_v41, %v1076_v34  ;;  %v1776_v54 = vpop.f32.mrb[1].mxu1 }
 0x387   : > { %v1084_v52 = vpop.f32.mrb[15].mxu0  ;;  %v2024_v5 = vadd.f32 %v1776_v54, %v1078_v58 }
 0x388   : > { %1789 = vst [vmem:[%s278_s26] sm:$0xff] %v2023_v2 }
 0x389   : > { %1796 = vst [vmem:[%s278_s26] sm:$0xf] %v2077_v47  ;;  %1790 = vst [vmem:[%s278_s26 + $0x8] sm:$0xff] %v2024_v5  ;;  %v1780_v23 = vpop.f32.mrb[2].mxu1 }
 0x38a   : > { %1797 = vst [vmem:[%s278_s26 + $0x8] sm:$0xf] %v1794_v37  ;;  %v2025_v17 = vadd.f32 %v1780_v23, %v1082_v24  ;;  %v1782_v7 = vpop.f32.mrb[3].mxu1 }
 0x38b   : > { %v2026_v19 = vadd.f32 %v1782_v7, %v1084_v52 }
 0x38c   : > { %1791 = vst [vmem:[%s278_s26 + $0x10] sm:$0xff] %v2025_v17 }
 0x38d   : > { %1792 = vst [vmem:[%s278_s26 + $0x18] sm:$0xff] %v2026_v19 }
 0x38e PF: > { %s17_s24 = sadd.s32 1, %s2084_s24  }
 0x38f   : > { %p14_p4 = scmp.ge.s32.totalorder %s17_s24, 4  }
 0x391   :  { %16 = sbr.rel (!%p14_p4) target bundleno = 1 (0x1), region = 93 }

</bundles_post_ra>
